<compile_context>
chip_gen: v5e
topology: v5e:2x2
jax: 0.10.0
libtpu: 0.0.40
codegen_flags: <defaults>
</compile_context>

<pallas_src>
import functools
import math

import jax
import jax.numpy as jnp
from jax.experimental import pallas as pl
from jax.experimental.pallas import tpu as pltpu

# ---------------- model dimensions (small, consistent with the forward pass) ----------------
H = 32            # hidden size == embedder.embedding_width()
FFN = 64          # feed-forward intermediate size
VOCAB = 128       # synthetic vocab
MAX_POS = 64      # max sequence length for position embeddings
N_LAYERS = 2      # synthetic BERT depth
NUM_CLASSES = 2   # word-segmentation classes
C_PAD = 128       # lane-padded classifier width (lane-dense output)
CLS_ID, SEP_ID = 101, 102
ATTN_SCALE = 1.0 / math.sqrt(H)
LN_EPS = 1e-12

_VMEM = pl.BlockSpec(memory_space=pltpu.MemorySpace.VMEM)
_SMEM = pl.BlockSpec(memory_space=pltpu.MemorySpace.SMEM)

# bias/LN slab row layout (per layer), width FFN; rows 0..8 use cols [:H], row 9 uses full FFN.
_R_BQ, _R_BK, _R_BV, _R_BO, _R_G1, _R_BE1, _R_B2, _R_G2, _R_BE2, _R_B1 = range(10)


# ------------------------------ in-kernel helpers ------------------------------
def _ln(x, g, b):
    mu = jnp.mean(x, axis=-1, keepdims=True)
    var = jnp.mean((x - mu) ** 2, axis=-1, keepdims=True)
    return (x - mu) * jax.lax.rsqrt(var + LN_EPS) * g + b


def _gelu(x):
    return 0.5 * x * (1.0 + jnp.tanh(0.7978845608028654 * (x + 0.044715 * x * x * x)))


def _softmax_last(x):
    x = x - jnp.max(x, axis=-1, keepdims=True)
    e = jnp.exp(x)
    return e * pl.reciprocal(jnp.sum(e, axis=-1, keepdims=True), approx=True)


# ------------------------------ fused Pallas kernel ------------------------------
def _fused_kernel(L, n, with_loss,
                  ids_ref, y_ref,
                  word_emb_ref, pos_emb_ref, emb_ln_ref,
                  wqkvo_ref, w1s_ref, w2s_ref, vec_ref,
                  cls_w_ref, cls_b_ref,
                  logits_ref, loss_ref,
                  x_scr):
    # ---- token-embedding gather: ids are SMEM scalars, word_emb is VMEM-resident ----
    for i in range(L):
        tok = ids_ref[i]
        x_scr[pl.ds(i, 1), :] = word_emb_ref[pl.ds(tok, 1), :]
    x = x_scr[...] + pos_emb_ref[pl.ds(0, L), :]
    x = _ln(x, emb_ln_ref[0], emb_ln_ref[1])                               # [L, H]

    # ---- encoder layers (statically unrolled; stacked weights stay resident in VMEM) ----
    for l in range(N_LAYERS):
        wl = wqkvo_ref[l]                      # (4, H, H): wq (pre-scaled), wk, wv, wo
        vl = vec_ref[l]                        # (10, FFN): biases + LN params slab
        w1 = w1s_ref[l]                        # (H, FFN)
        w2 = w2s_ref[l]                        # (FFN, H)

        q = jnp.dot(x, wl[0], preferred_element_type=jnp.float32) + vl[_R_BQ, :H]
        k = jnp.dot(x, wl[1], preferred_element_type=jnp.float32) + vl[_R_BK, :H]
        v = jnp.dot(x, wl[2], preferred_element_type=jnp.float32) + vl[_R_BV, :H]

        # q @ k^T without materializing a transpose (ATTN_SCALE already folded into wq)
        scores = jax.lax.dot_general(q, k, (((1,), (1,)), ((), ())),
                                     preferred_element_type=jnp.float32)   # [L, L]
        probs = _softmax_last(scores)
        ctx = jnp.dot(probs, v, preferred_element_type=jnp.float32)        # [L, H]

        attn_out = jnp.dot(ctx, wl[3], preferred_element_type=jnp.float32) + vl[_R_BO, :H]
        h = _ln(x + attn_out, vl[_R_G1, :H], vl[_R_BE1, :H])

        f = _gelu(jnp.dot(h, w1, preferred_element_type=jnp.float32) + vl[_R_B1, :])
        f = jnp.dot(f, w2, preferred_element_type=jnp.float32) + vl[_R_B2, :H]
        x = _ln(h + f, vl[_R_G2, :H], vl[_R_BE2, :H])

    # ---- embedder(pooled_output, i) for i in 1..L-3  ->  [n, H] ----
    proc = x[1:L - 2, :]

    # ---- DropoutClassifier (eval-mode dropout == identity) + Linear(H, 2), lane-padded ----
    logits = jnp.dot(proc, cls_w_ref[...], preferred_element_type=jnp.float32) + cls_b_ref[...]
    logits_ref[...] = logits                                               # [n, C_PAD]

    if with_loss:
        # CrossEntropyLoss (mean reduction) over the first NUM_CLASSES (unpadded) columns.
        col = jax.lax.broadcasted_iota(jnp.int32, (n, C_PAD), 1)
        valid = col < NUM_CLASSES
        ml = jnp.where(valid, logits, jnp.float32(-1e30))
        m = jnp.max(ml, axis=-1, keepdims=True)
        e = jnp.where(valid, jnp.exp(ml - m), 0.0)
        lse = m + jnp.log(jnp.sum(e, axis=-1, keepdims=True))              # [n, 1]
        onehot = (col == y_ref[...]).astype(jnp.float32)                   # y_ref: [n, 1]
        picked = jnp.sum(logits * onehot, axis=-1, keepdims=True)          # [n, 1]
        loss_ref[0, 0] = jnp.sum(lse - picked) * jnp.float32(1.0 / n)      # 1/n is static
    else:
        loss_ref[0, 0] = jnp.float32(0.0)


# ------------------------------ parameter init (deterministic, synthetic) ------------------------------
def init_params(key):
    keys = iter(jax.random.split(key, 16))

    def w(shape):
        return (0.02 * jax.random.normal(next(keys), shape)).astype(jnp.float32)

    wq = w((N_LAYERS, H, H)) * jnp.float32(ATTN_SCALE)   # fold attention scale into wq
    wk = w((N_LAYERS, H, H))
    wv = w((N_LAYERS, H, H))
    wo = w((N_LAYERS, H, H))

    # bias/LN slab: biases zero, LN gammas one (matches the previous version's init semantics)
    vec = jnp.zeros((N_LAYERS, 10, FFN), jnp.float32)
    vec = vec.at[:, _R_G1, :H].set(1.0)
    vec = vec.at[:, _R_G2, :H].set(1.0)

    cls_w = jnp.zeros((H, C_PAD), jnp.float32).at[:, :NUM_CLASSES].set(w((H, NUM_CLASSES)))

    return {
        'word_emb': w((VOCAB, H)),
        'pos_emb': w((MAX_POS, H)),
        'emb_ln': jnp.concatenate([jnp.ones((1, H), jnp.float32),
                                   jnp.zeros((1, H), jnp.float32)], axis=0),   # [gamma; beta]
        'wqkvo': jnp.stack([wq, wk, wv, wo], axis=1),      # (N_LAYERS, 4, H, H)
        'w1': w((N_LAYERS, H, FFN)),                       # (N_LAYERS, H, FFN)
        'w2': w((N_LAYERS, FFN, H)),                       # (N_LAYERS, FFN, H)
        'vec': vec,                                        # (N_LAYERS, 10, FFN)
        'cls_w': cls_w,                                    # (H, C_PAD), cols >= 2 are zero
        'cls_b': jnp.zeros((1, C_PAD), jnp.float32),
    }


# ------------------------------ forward pass (mirrors BertForWordSegmentation.forward) ------------------------------
def bert_for_word_segmentation(params, input_token_ids, labels=None):
    # bert_tokens = ['[CLS]'] + input_tokens + ['[SEP]']  -> indexed token ids
    ids = jnp.concatenate([
        jnp.array([CLS_ID], jnp.int32),
        input_token_ids.astype(jnp.int32),
        jnp.array([SEP_ID], jnp.int32),
    ])
    L = int(ids.shape[0])                      # mirrors assert len(indexed_tokens) == seq len
    n = L - 3
    assert L <= MAX_POS and n >= 1

    with_loss = labels is not None
    if with_loss:
        y = labels[:labels.shape[0] - 1].astype(jnp.int32).reshape(n, 1)
    else:
        y = jnp.zeros((n, 1), jnp.int32)

    logits_pad, loss = pl.pallas_call(
        functools.partial(_fused_kernel, L, n, with_loss),
        out_shape=(jax.ShapeDtypeStruct((n, C_PAD), jnp.float32),
                   jax.ShapeDtypeStruct((1, 1), jnp.float32)),
        in_specs=[_SMEM, _VMEM, _VMEM, _VMEM, _VMEM,
                  _VMEM, _VMEM, _VMEM, _VMEM, _VMEM, _VMEM],
        out_specs=(_VMEM, _SMEM),
        scratch_shapes=[pltpu.VMEM((L, H), jnp.float32)],
    )(ids, y,
      params['word_emb'], params['pos_emb'], params['emb_ln'],
      params['wqkvo'], params['w1'], params['w2'], params['vec'],
      params['cls_w'], params['cls_b'])

    logits = logits_pad[:, :NUM_CLASSES]       # drop lane padding
    return logits, (loss[0, 0] if with_loss else None)


# ------------------------------ main ------------------------------
if __name__ == "__main__":
    key = jax.random.PRNGKey(0)
    k_param, k_tok, k_lab = jax.random.split(key, 3)

    params = init_params(k_param)

    seq = 8                                            # number of input tokens
    input_tokens = jax.random.randint(k_tok, (seq,), 0, VOCAB, dtype=jnp.int32)
    labels = jax.random.randint(k_lab, (seq,), 0, NUM_CLASSES, dtype=jnp.int32)

    logits, loss = bert_for_word_segmentation(params, input_tokens, labels)
    jax.block_until_ready((logits, loss))

    assert logits.shape == (seq - 1, NUM_CLASSES)      # L-3 == seq-1 rows, 2 classes
    assert loss.shape == ()
    print("KERNEL_OK")
</pallas_src>

<mosaic_0001>
module attributes {stable_mosaic.version = 11 : i64} {
  func.func @_fused_kernel(%arg0: memref<10xi32, #tpu.memory_space<smem>>, %arg1: memref<7x1xi32, #tpu.memory_space<vmem>>, %arg2: memref<128x32xf32, #tpu.memory_space<vmem>>, %arg3: memref<64x32xf32, #tpu.memory_space<vmem>>, %arg4: memref<2x32xf32, #tpu.memory_space<vmem>>, %arg5: memref<2x4x32x32xf32, #tpu.memory_space<vmem>>, %arg6: memref<2x32x64xf32, #tpu.memory_space<vmem>>, %arg7: memref<2x64x32xf32, #tpu.memory_space<vmem>>, %arg8: memref<2x10x64xf32, #tpu.memory_space<vmem>>, %arg9: memref<32x128xf32, #tpu.memory_space<vmem>>, %arg10: memref<1x128xf32, #tpu.memory_space<vmem>>, %arg11: memref<7x128xf32, #tpu.memory_space<vmem>>, %arg12: memref<1x1xf32, #tpu.memory_space<smem>>, %arg13: memref<10x32xf32, #tpu.memory_space<vmem>>) attributes {dimension_semantics = [], scalar_prefetch = 0 : i64, scratch_operands = 1 : i64, tpu.core_type = #tpu.core_type<tc>} {
    %c0 = arith.constant 0 : index
    %0 = memref.load %arg0[%c0] : memref<10xi32, #tpu.memory_space<smem>>
    %1 = arith.index_cast %0 : i32 to index
    %c0_0 = arith.constant 0 : index
    %2 = vector.load %arg2[%1, %c0_0] : memref<128x32xf32, #tpu.memory_space<vmem>>, vector<1x32xf32>
    %c0_1 = arith.constant 0 : index
    %c0_2 = arith.constant 0 : index
    %3 = vector.load %arg13[%c0_1, %c0_2] : memref<10x32xf32, #tpu.memory_space<vmem>>, vector<1x32xf32>
    tpu.vector_store %arg13[%c0_1, %c0_2], %2 {strides = array<i32>} : memref<10x32xf32, #tpu.memory_space<vmem>>, vector<1x32xf32>,
    %c1 = arith.constant 1 : index
    %4 = memref.load %arg0[%c1] : memref<10xi32, #tpu.memory_space<smem>>
    %5 = arith.index_cast %4 : i32 to index
    %c0_3 = arith.constant 0 : index
    %6 = vector.load %arg2[%5, %c0_3] : memref<128x32xf32, #tpu.memory_space<vmem>>, vector<1x32xf32>
    %c1_4 = arith.constant 1 : index
    %c0_5 = arith.constant 0 : index
    %7 = vector.load %arg13[%c1_4, %c0_5] : memref<10x32xf32, #tpu.memory_space<vmem>>, vector<1x32xf32>
    tpu.vector_store %arg13[%c1_4, %c0_5], %6 {strides = array<i32>} : memref<10x32xf32, #tpu.memory_space<vmem>>, vector<1x32xf32>,
    %c2 = arith.constant 2 : index
    %8 = memref.load %arg0[%c2] : memref<10xi32, #tpu.memory_space<smem>>
    %9 = arith.index_cast %8 : i32 to index
    %c0_6 = arith.constant 0 : index
    %10 = vector.load %arg2[%9, %c0_6] : memref<128x32xf32, #tpu.memory_space<vmem>>, vector<1x32xf32>
    %c2_7 = arith.constant 2 : index
    %c0_8 = arith.constant 0 : index
    %11 = vector.load %arg13[%c2_7, %c0_8] : memref<10x32xf32, #tpu.memory_space<vmem>>, vector<1x32xf32>
    tpu.vector_store %arg13[%c2_7, %c0_8], %10 {strides = array<i32>} : memref<10x32xf32, #tpu.memory_space<vmem>>, vector<1x32xf32>,
    %c3 = arith.constant 3 : index
    %12 = memref.load %arg0[%c3] : memref<10xi32, #tpu.memory_space<smem>>
    %13 = arith.index_cast %12 : i32 to index
    %c0_9 = arith.constant 0 : index
    %14 = vector.load %arg2[%13, %c0_9] : memref<128x32xf32, #tpu.memory_space<vmem>>, vector<1x32xf32>
    %c3_10 = arith.constant 3 : index
    %c0_11 = arith.constant 0 : index
    %15 = vector.load %arg13[%c3_10, %c0_11] : memref<10x32xf32, #tpu.memory_space<vmem>>, vector<1x32xf32>
    tpu.vector_store %arg13[%c3_10, %c0_11], %14 {strides = array<i32>} : memref<10x32xf32, #tpu.memory_space<vmem>>, vector<1x32xf32>,
    %c4 = arith.constant 4 : index
    %16 = memref.load %arg0[%c4] : memref<10xi32, #tpu.memory_space<smem>>
    %17 = arith.index_cast %16 : i32 to index
    %c0_12 = arith.constant 0 : index
    %18 = vector.load %arg2[%17, %c0_12] : memref<128x32xf32, #tpu.memory_space<vmem>>, vector<1x32xf32>
    %c4_13 = arith.constant 4 : index
    %c0_14 = arith.constant 0 : index
    %19 = vector.load %arg13[%c4_13, %c0_14] : memref<10x32xf32, #tpu.memory_space<vmem>>, vector<1x32xf32>
    tpu.vector_store %arg13[%c4_13, %c0_14], %18 {strides = array<i32>} : memref<10x32xf32, #tpu.memory_space<vmem>>, vector<1x32xf32>,
    %c5 = arith.constant 5 : index
    %20 = memref.load %arg0[%c5] : memref<10xi32, #tpu.memory_space<smem>>
    %21 = arith.index_cast %20 : i32 to index
    %c0_15 = arith.constant 0 : index
    %22 = vector.load %arg2[%21, %c0_15] : memref<128x32xf32, #tpu.memory_space<vmem>>, vector<1x32xf32>
    %c5_16 = arith.constant 5 : index
    %c0_17 = arith.constant 0 : index
    %23 = vector.load %arg13[%c5_16, %c0_17] : memref<10x32xf32, #tpu.memory_space<vmem>>, vector<1x32xf32>
    tpu.vector_store %arg13[%c5_16, %c0_17], %22 {strides = array<i32>} : memref<10x32xf32, #tpu.memory_space<vmem>>, vector<1x32xf32>,
    %c6 = arith.constant 6 : index
    %24 = memref.load %arg0[%c6] : memref<10xi32, #tpu.memory_space<smem>>
    %25 = arith.index_cast %24 : i32 to index
    %c0_18 = arith.constant 0 : index
    %26 = vector.load %arg2[%25, %c0_18] : memref<128x32xf32, #tpu.memory_space<vmem>>, vector<1x32xf32>
    %c6_19 = arith.constant 6 : index
    %c0_20 = arith.constant 0 : index
    %27 = vector.load %arg13[%c6_19, %c0_20] : memref<10x32xf32, #tpu.memory_space<vmem>>, vector<1x32xf32>
    tpu.vector_store %arg13[%c6_19, %c0_20], %26 {strides = array<i32>} : memref<10x32xf32, #tpu.memory_space<vmem>>, vector<1x32xf32>,
    %c7 = arith.constant 7 : index
    %28 = memref.load %arg0[%c7] : memref<10xi32, #tpu.memory_space<smem>>
    %29 = arith.index_cast %28 : i32 to index
    %c0_21 = arith.constant 0 : index
    %30 = vector.load %arg2[%29, %c0_21] : memref<128x32xf32, #tpu.memory_space<vmem>>, vector<1x32xf32>
    %c7_22 = arith.constant 7 : index
    %c0_23 = arith.constant 0 : index
    %31 = vector.load %arg13[%c7_22, %c0_23] : memref<10x32xf32, #tpu.memory_space<vmem>>, vector<1x32xf32>
    tpu.vector_store %arg13[%c7_22, %c0_23], %30 {strides = array<i32>} : memref<10x32xf32, #tpu.memory_space<vmem>>, vector<1x32xf32>,
    %c8 = arith.constant 8 : index
    %32 = memref.load %arg0[%c8] : memref<10xi32, #tpu.memory_space<smem>>
    %33 = arith.index_cast %32 : i32 to index
    %c0_24 = arith.constant 0 : index
    %34 = vector.load %arg2[%33, %c0_24] : memref<128x32xf32, #tpu.memory_space<vmem>>, vector<1x32xf32>
    %c8_25 = arith.constant 8 : index
    %c0_26 = arith.constant 0 : index
    %35 = vector.load %arg13[%c8_25, %c0_26] : memref<10x32xf32, #tpu.memory_space<vmem>>, vector<1x32xf32>
    tpu.vector_store %arg13[%c8_25, %c0_26], %34 {strides = array<i32>} : memref<10x32xf32, #tpu.memory_space<vmem>>, vector<1x32xf32>,
    %c9 = arith.constant 9 : index
    %36 = memref.load %arg0[%c9] : memref<10xi32, #tpu.memory_space<smem>>
    %37 = arith.index_cast %36 : i32 to index
    %c0_27 = arith.constant 0 : index
    %38 = vector.load %arg2[%37, %c0_27] : memref<128x32xf32, #tpu.memory_space<vmem>>, vector<1x32xf32>
    %c9_28 = arith.constant 9 : index
    %c0_29 = arith.constant 0 : index
    %39 = vector.load %arg13[%c9_28, %c0_29] : memref<10x32xf32, #tpu.memory_space<vmem>>, vector<1x32xf32>
    tpu.vector_store %arg13[%c9_28, %c0_29], %38 {strides = array<i32>} : memref<10x32xf32, #tpu.memory_space<vmem>>, vector<1x32xf32>,
    %c0_30 = arith.constant 0 : index
    %c0_31 = arith.constant 0 : index
    %40 = vector.load %arg13[%c0_30, %c0_31] : memref<10x32xf32, #tpu.memory_space<vmem>>, vector<10x32xf32>
    %c0_32 = arith.constant 0 : index
    %c0_33 = arith.constant 0 : index
    %41 = vector.load %arg3[%c0_32, %c0_33] : memref<64x32xf32, #tpu.memory_space<vmem>>, vector<10x32xf32>
    %42 = arith.addf %40, %41 : vector<10x32xf32>
    %c0_34 = arith.constant 0 : index
    %c0_35 = arith.constant 0 : index
    %43 = vector.load %arg4[%c0_34, %c0_35] : memref<2x32xf32, #tpu.memory_space<vmem>>, vector<1x32xf32>
    %44 = vector.shape_cast %43 : vector<1x32xf32> to vector<32xf32>
    %c1_36 = arith.constant 1 : index
    %c0_37 = arith.constant 0 : index
    %45 = vector.load %arg4[%c1_36, %c0_37] : memref<2x32xf32, #tpu.memory_space<vmem>>, vector<1x32xf32>
    %46 = vector.shape_cast %45 : vector<1x32xf32> to vector<32xf32>
    %cst = arith.constant dense<0.000000e+00> : vector<10xf32>
    %47 = vector.multi_reduction <add>, %42, %cst [1] : vector<10x32xf32> to vector<10xf32>
    %48 = vector.shape_cast %47 : vector<10xf32> to vector<10x1xf32>
    %cst_38 = arith.constant 3.200000e+01 : f32
    %49 = vector.broadcast %cst_38 : f32 to vector<10x1xf32>
    %50 = arith.divf %48, %49 : vector<10x1xf32>
    %51 = vector.broadcast %50 : vector<10x1xf32> to vector<10x32xf32>
    %52 = arith.subf %42, %51 : vector<10x32xf32>
    %53 = arith.mulf %52, %52 : vector<10x32xf32>
    %cst_39 = arith.constant dense<0.000000e+00> : vector<10xf32>
    %54 = vector.multi_reduction <add>, %53, %cst_39 [1] : vector<10x32xf32> to vector<10xf32>
    %55 = vector.shape_cast %54 : vector<10xf32> to vector<10x1xf32>
    %cst_40 = arith.constant 3.200000e+01 : f32
    %56 = vector.broadcast %cst_40 : f32 to vector<10x1xf32>
    %57 = arith.divf %55, %56 : vector<10x1xf32>
    %58 = vector.broadcast %50 : vector<10x1xf32> to vector<10x32xf32>
    %59 = arith.subf %42, %58 : vector<10x32xf32>
    %cst_41 = arith.constant 9.99999996E-13 : f32
    %60 = vector.broadcast %cst_41 : f32 to vector<10x1xf32>
    %61 = arith.addf %57, %60 : vector<10x1xf32>
    %62 = math.rsqrt %61 : vector<10x1xf32>
    %63 = vector.broadcast %62 : vector<10x1xf32> to vector<10x32xf32>
    %64 = arith.mulf %59, %63 : vector<10x32xf32>
    %65 = vector.shape_cast %44 : vector<32xf32> to vector<1x32xf32>
    %66 = vector.broadcast %65 : vector<1x32xf32> to vector<10x32xf32>
    %67 = arith.mulf %64, %66 : vector<10x32xf32>
    %68 = vector.shape_cast %46 : vector<32xf32> to vector<1x32xf32>
    %69 = vector.broadcast %68 : vector<1x32xf32> to vector<10x32xf32>
    %70 = arith.addf %67, %69 : vector<10x32xf32>
    %c0_42 = arith.constant 0 : index
    %c0_43 = arith.constant 0 : index
    %c0_44 = arith.constant 0 : index
    %c0_45 = arith.constant 0 : index
    %71 = vector.load %arg5[%c0_42, %c0_43, %c0_44, %c0_45] : memref<2x4x32x32xf32, #tpu.memory_space<vmem>>, vector<1x4x32x32xf32>
    %72 = vector.shape_cast %71 : vector<1x4x32x32xf32> to vector<4x32x32xf32>
    %c0_46 = arith.constant 0 : index
    %c0_47 = arith.constant 0 : index
    %c0_48 = arith.constant 0 : index
    %73 = vector.load %arg8[%c0_46, %c0_47, %c0_48] : memref<2x10x64xf32, #tpu.memory_space<vmem>>, vector<1x10x64xf32>
    %74 = vector.shape_cast %73 : vector<1x10x64xf32> to vector<10x64xf32>
    %c0_49 = arith.constant 0 : index
    %c0_50 = arith.constant 0 : index
    %c0_51 = arith.constant 0 : index
    %75 = vector.load %arg6[%c0_49, %c0_50, %c0_51] : memref<2x32x64xf32, #tpu.memory_space<vmem>>, vector<1x32x64xf32>
    %76 = vector.shape_cast %75 : vector<1x32x64xf32> to vector<32x64xf32>
    %c0_52 = arith.constant 0 : index
    %c0_53 = arith.constant 0 : index
    %c0_54 = arith.constant 0 : index
    %77 = vector.load %arg7[%c0_52, %c0_53, %c0_54] : memref<2x64x32xf32, #tpu.memory_space<vmem>>, vector<1x64x32xf32>
    %78 = vector.shape_cast %77 : vector<1x64x32xf32> to vector<64x32xf32>
    %79 = vector.extract_strided_slice %72 {offsets = [0, 0, 0], sizes = [1, 32, 32], strides = [1, 1, 1]} : vector<4x32x32xf32> to vector<1x32x32xf32>
    %80 = vector.shape_cast %79 : vector<1x32x32xf32> to vector<32x32xf32>
    %cst_55 = arith.constant dense<0.000000e+00> : vector<10x32xf32>
    %81 = tpu.matmul %70, %80, %cst_55 {dimension_numbers = #tpu.dot_dimension_numbers<[1], [0], [0], [1], [0, 0, 1, 1], [], []>} : vector<10x32xf32>, vector<32x32xf32>, vector<10x32xf32> -> vector<10x32xf32>
    %82 = vector.extract_strided_slice %74 {offsets = [0, 0], sizes = [1, 32], strides = [1, 1]} : vector<10x64xf32> to vector<1x32xf32>
    %83 = vector.shape_cast %82 : vector<1x32xf32> to vector<32xf32>
    %84 = vector.shape_cast %83 : vector<32xf32> to vector<1x32xf32>
    %85 = vector.broadcast %84 : vector<1x32xf32> to vector<10x32xf32>
    %86 = arith.addf %81, %85 : vector<10x32xf32>
    %87 = vector.extract_strided_slice %72 {offsets = [1, 0, 0], sizes = [1, 32, 32], strides = [1, 1, 1]} : vector<4x32x32xf32> to vector<1x32x32xf32>
    %88 = vector.shape_cast %87 : vector<1x32x32xf32> to vector<32x32xf32>
    %cst_56 = arith.constant dense<0.000000e+00> : vector<10x32xf32>
    %89 = tpu.matmul %70, %88, %cst_56 {dimension_numbers = #tpu.dot_dimension_numbers<[1], [0], [0], [1], [0, 0, 1, 1], [], []>} : vector<10x32xf32>, vector<32x32xf32>, vector<10x32xf32> -> vector<10x32xf32>
    %90 = vector.extract_strided_slice %74 {offsets = [1, 0], sizes = [1, 32], strides = [1, 1]} : vector<10x64xf32> to vector<1x32xf32>
    %91 = vector.shape_cast %90 : vector<1x32xf32> to vector<32xf32>
    %92 = vector.shape_cast %91 : vector<32xf32> to vector<1x32xf32>
    %93 = vector.broadcast %92 : vector<1x32xf32> to vector<10x32xf32>
    %94 = arith.addf %89, %93 : vector<10x32xf32>
    %95 = vector.extract_strided_slice %72 {offsets = [2, 0, 0], sizes = [1, 32, 32], strides = [1, 1, 1]} : vector<4x32x32xf32> to vector<1x32x32xf32>
    %96 = vector.shape_cast %95 : vector<1x32x32xf32> to vector<32x32xf32>
    %cst_57 = arith.constant dense<0.000000e+00> : vector<10x32xf32>
    %97 = tpu.matmul %70, %96, %cst_57 {dimension_numbers = #tpu.dot_dimension_numbers<[1], [0], [0], [1], [0, 0, 1, 1], [], []>} : vector<10x32xf32>, vector<32x32xf32>, vector<10x32xf32> -> vector<10x32xf32>
    %98 = vector.extract_strided_slice %74 {offsets = [2, 0], sizes = [1, 32], strides = [1, 1]} : vector<10x64xf32> to vector<1x32xf32>
    %99 = vector.shape_cast %98 : vector<1x32xf32> to vector<32xf32>
    %100 = vector.shape_cast %99 : vector<32xf32> to vector<1x32xf32>
    %101 = vector.broadcast %100 : vector<1x32xf32> to vector<10x32xf32>
    %102 = arith.addf %97, %101 : vector<10x32xf32>
    %cst_58 = arith.constant dense<0.000000e+00> : vector<10x10xf32>
    %103 = tpu.matmul %86, %94, %cst_58 {dimension_numbers = #tpu.dot_dimension_numbers<[1], [1], [0], [0], [0, 0, 1, 0], [], []>} : vector<10x32xf32>, vector<10x32xf32>, vector<10x10xf32> -> vector<10x10xf32>
    %cst_59 = arith.constant dense<0xFF800000> : vector<10xf32>
    %104 = vector.multi_reduction <maximumf>, %103, %cst_59 [1] : vector<10x10xf32> to vector<10xf32>
    %105 = vector.shape_cast %104 : vector<10xf32> to vector<10x1xf32>
    %106 = vector.broadcast %105 : vector<10x1xf32> to vector<10x10xf32>
    %107 = arith.subf %103, %106 : vector<10x10xf32>
    %108 = math.exp %107 : vector<10x10xf32>
    %cst_60 = arith.constant dense<0.000000e+00> : vector<10xf32>
    %109 = vector.multi_reduction <add>, %108, %cst_60 [1] : vector<10x10xf32> to vector<10xf32>
    %110 = vector.shape_cast %109 : vector<10xf32> to vector<10x1xf32>
    %111 = tpu.reciprocal %110 {approx = true} : vector<10x1xf32> -> vector<10x1xf32>
    %112 = vector.broadcast %111 : vector<10x1xf32> to vector<10x10xf32>
    %113 = arith.mulf %108, %112 : vector<10x10xf32>
    %cst_61 = arith.constant dense<0.000000e+00> : vector<10x32xf32>
    %114 = tpu.matmul %113, %102, %cst_61 {dimension_numbers = #tpu.dot_dimension_numbers<[1], [0], [0], [1], [0, 0, 1, 1], [], []>} : vector<10x10xf32>, vector<10x32xf32>, vector<10x32xf32> -> vector<10x32xf32>
    %115 = vector.extract_strided_slice %72 {offsets = [3, 0, 0], sizes = [1, 32, 32], strides = [1, 1, 1]} : vector<4x32x32xf32> to vector<1x32x32xf32>
    %116 = vector.shape_cast %115 : vector<1x32x32xf32> to vector<32x32xf32>
    %cst_62 = arith.constant dense<0.000000e+00> : vector<10x32xf32>
    %117 = tpu.matmul %114, %116, %cst_62 {dimension_numbers = #tpu.dot_dimension_numbers<[1], [0], [0], [1], [0, 0, 1, 1], [], []>} : vector<10x32xf32>, vector<32x32xf32>, vector<10x32xf32> -> vector<10x32xf32>
    %118 = vector.extract_strided_slice %74 {offsets = [3, 0], sizes = [1, 32], strides = [1, 1]} : vector<10x64xf32> to vector<1x32xf32>
    %119 = vector.shape_cast %118 : vector<1x32xf32> to vector<32xf32>
    %120 = vector.shape_cast %119 : vector<32xf32> to vector<1x32xf32>
    %121 = vector.broadcast %120 : vector<1x32xf32> to vector<10x32xf32>
    %122 = arith.addf %117, %121 : vector<10x32xf32>
    %123 = arith.addf %70, %122 : vector<10x32xf32>
    %124 = vector.extract_strided_slice %74 {offsets = [4, 0], sizes = [1, 32], strides = [1, 1]} : vector<10x64xf32> to vector<1x32xf32>
    %125 = vector.shape_cast %124 : vector<1x32xf32> to vector<32xf32>
    %126 = vector.extract_strided_slice %74 {offsets = [5, 0], sizes = [1, 32], strides = [1, 1]} : vector<10x64xf32> to vector<1x32xf32>
    %127 = vector.shape_cast %126 : vector<1x32xf32> to vector<32xf32>
    %cst_63 = arith.constant dense<0.000000e+00> : vector<10xf32>
    %128 = vector.multi_reduction <add>, %123, %cst_63 [1] : vector<10x32xf32> to vector<10xf32>
    %129 = vector.shape_cast %128 : vector<10xf32> to vector<10x1xf32>
    %cst_64 = arith.constant 3.200000e+01 : f32
    %130 = vector.broadcast %cst_64 : f32 to vector<10x1xf32>
    %131 = arith.divf %129, %130 : vector<10x1xf32>
    %132 = vector.broadcast %131 : vector<10x1xf32> to vector<10x32xf32>
    %133 = arith.subf %123, %132 : vector<10x32xf32>
    %134 = arith.mulf %133, %133 : vector<10x32xf32>
    %cst_65 = arith.constant dense<0.000000e+00> : vector<10xf32>
    %135 = vector.multi_reduction <add>, %134, %cst_65 [1] : vector<10x32xf32> to vector<10xf32>
    %136 = vector.shape_cast %135 : vector<10xf32> to vector<10x1xf32>
    %cst_66 = arith.constant 3.200000e+01 : f32
    %137 = vector.broadcast %cst_66 : f32 to vector<10x1xf32>
    %138 = arith.divf %136, %137 : vector<10x1xf32>
    %139 = vector.broadcast %131 : vector<10x1xf32> to vector<10x32xf32>
    %140 = arith.subf %123, %139 : vector<10x32xf32>
    %cst_67 = arith.constant 9.99999996E-13 : f32
    %141 = vector.broadcast %cst_67 : f32 to vector<10x1xf32>
    %142 = arith.addf %138, %141 : vector<10x1xf32>
    %143 = math.rsqrt %142 : vector<10x1xf32>
    %144 = vector.broadcast %143 : vector<10x1xf32> to vector<10x32xf32>
    %145 = arith.mulf %140, %144 : vector<10x32xf32>
    %146 = vector.shape_cast %125 : vector<32xf32> to vector<1x32xf32>
    %147 = vector.broadcast %146 : vector<1x32xf32> to vector<10x32xf32>
    %148 = arith.mulf %145, %147 : vector<10x32xf32>
    %149 = vector.shape_cast %127 : vector<32xf32> to vector<1x32xf32>
    %150 = vector.broadcast %149 : vector<1x32xf32> to vector<10x32xf32>
    %151 = arith.addf %148, %150 : vector<10x32xf32>
    %cst_68 = arith.constant dense<0.000000e+00> : vector<10x64xf32>
    %152 = tpu.matmul %151, %76, %cst_68 {dimension_numbers = #tpu.dot_dimension_numbers<[1], [0], [0], [1], [0, 0, 1, 1], [], []>} : vector<10x32xf32>, vector<32x64xf32>, vector<10x64xf32> -> vector<10x64xf32>
    %153 = vector.extract_strided_slice %74 {offsets = [9, 0], sizes = [1, 64], strides = [1, 1]} : vector<10x64xf32> to vector<1x64xf32>
    %154 = vector.shape_cast %153 : vector<1x64xf32> to vector<64xf32>
    %155 = vector.shape_cast %154 : vector<64xf32> to vector<1x64xf32>
    %156 = vector.broadcast %155 : vector<1x64xf32> to vector<10x64xf32>
    %157 = arith.addf %152, %156 : vector<10x64xf32>
    %cst_69 = arith.constant 5.000000e-01 : f32
    %158 = vector.broadcast %cst_69 : f32 to vector<10x64xf32>
    %159 = arith.mulf %158, %157 : vector<10x64xf32>
    %cst_70 = arith.constant 4.471500e-02 : f32
    %160 = vector.broadcast %cst_70 : f32 to vector<10x64xf32>
    %161 = arith.mulf %160, %157 : vector<10x64xf32>
    %162 = arith.mulf %161, %157 : vector<10x64xf32>
    %163 = arith.mulf %162, %157 : vector<10x64xf32>
    %164 = arith.addf %157, %163 : vector<10x64xf32>
    %cst_71 = arith.constant 0.797884583 : f32
    %165 = vector.broadcast %cst_71 : f32 to vector<10x64xf32>
    %166 = arith.mulf %165, %164 : vector<10x64xf32>
    %167 = math.tanh %166 : vector<10x64xf32>
    %cst_72 = arith.constant 1.000000e+00 : f32
    %168 = vector.broadcast %cst_72 : f32 to vector<10x64xf32>
    %169 = arith.addf %168, %167 : vector<10x64xf32>
    %170 = arith.mulf %159, %169 : vector<10x64xf32>
    %cst_73 = arith.constant dense<0.000000e+00> : vector<10x32xf32>
    %171 = tpu.matmul %170, %78, %cst_73 {dimension_numbers = #tpu.dot_dimension_numbers<[1], [0], [0], [1], [0, 0, 1, 1], [], []>} : vector<10x64xf32>, vector<64x32xf32>, vector<10x32xf32> -> vector<10x32xf32>
    %172 = vector.extract_strided_slice %74 {offsets = [6, 0], sizes = [1, 32], strides = [1, 1]} : vector<10x64xf32> to vector<1x32xf32>
    %173 = vector.shape_cast %172 : vector<1x32xf32> to vector<32xf32>
    %174 = vector.shape_cast %173 : vector<32xf32> to vector<1x32xf32>
    %175 = vector.broadcast %174 : vector<1x32xf32> to vector<10x32xf32>
    %176 = arith.addf %171, %175 : vector<10x32xf32>
    %177 = arith.addf %151, %176 : vector<10x32xf32>
    %178 = vector.extract_strided_slice %74 {offsets = [7, 0], sizes = [1, 32], strides = [1, 1]} : vector<10x64xf32> to vector<1x32xf32>
    %179 = vector.shape_cast %178 : vector<1x32xf32> to vector<32xf32>
    %180 = vector.extract_strided_slice %74 {offsets = [8, 0], sizes = [1, 32], strides = [1, 1]} : vector<10x64xf32> to vector<1x32xf32>
    %181 = vector.shape_cast %180 : vector<1x32xf32> to vector<32xf32>
    %cst_74 = arith.constant dense<0.000000e+00> : vector<10xf32>
    %182 = vector.multi_reduction <add>, %177, %cst_74 [1] : vector<10x32xf32> to vector<10xf32>
    %183 = vector.shape_cast %182 : vector<10xf32> to vector<10x1xf32>
    %cst_75 = arith.constant 3.200000e+01 : f32
    %184 = vector.broadcast %cst_75 : f32 to vector<10x1xf32>
    %185 = arith.divf %183, %184 : vector<10x1xf32>
    %186 = vector.broadcast %185 : vector<10x1xf32> to vector<10x32xf32>
    %187 = arith.subf %177, %186 : vector<10x32xf32>
    %188 = arith.mulf %187, %187 : vector<10x32xf32>
    %cst_76 = arith.constant dense<0.000000e+00> : vector<10xf32>
    %189 = vector.multi_reduction <add>, %188, %cst_76 [1] : vector<10x32xf32> to vector<10xf32>
    %190 = vector.shape_cast %189 : vector<10xf32> to vector<10x1xf32>
    %cst_77 = arith.constant 3.200000e+01 : f32
    %191 = vector.broadcast %cst_77 : f32 to vector<10x1xf32>
    %192 = arith.divf %190, %191 : vector<10x1xf32>
    %193 = vector.broadcast %185 : vector<10x1xf32> to vector<10x32xf32>
    %194 = arith.subf %177, %193 : vector<10x32xf32>
    %cst_78 = arith.constant 9.99999996E-13 : f32
    %195 = vector.broadcast %cst_78 : f32 to vector<10x1xf32>
    %196 = arith.addf %192, %195 : vector<10x1xf32>
    %197 = math.rsqrt %196 : vector<10x1xf32>
    %198 = vector.broadcast %197 : vector<10x1xf32> to vector<10x32xf32>
    %199 = arith.mulf %194, %198 : vector<10x32xf32>
    %200 = vector.shape_cast %179 : vector<32xf32> to vector<1x32xf32>
    %201 = vector.broadcast %200 : vector<1x32xf32> to vector<10x32xf32>
    %202 = arith.mulf %199, %201 : vector<10x32xf32>
    %203 = vector.shape_cast %181 : vector<32xf32> to vector<1x32xf32>
    %204 = vector.broadcast %203 : vector<1x32xf32> to vector<10x32xf32>
    %205 = arith.addf %202, %204 : vector<10x32xf32>
    %c1_79 = arith.constant 1 : index
    %c0_80 = arith.constant 0 : index
    %c0_81 = arith.constant 0 : index
    %c0_82 = arith.constant 0 : index
    %206 = vector.load %arg5[%c1_79, %c0_80, %c0_81, %c0_82] : memref<2x4x32x32xf32, #tpu.memory_space<vmem>>, vector<1x4x32x32xf32>
    %207 = vector.shape_cast %206 : vector<1x4x32x32xf32> to vector<4x32x32xf32>
    %c1_83 = arith.constant 1 : index
    %c0_84 = arith.constant 0 : index
    %c0_85 = arith.constant 0 : index
    %208 = vector.load %arg8[%c1_83, %c0_84, %c0_85] : memref<2x10x64xf32, #tpu.memory_space<vmem>>, vector<1x10x64xf32>
    %209 = vector.shape_cast %208 : vector<1x10x64xf32> to vector<10x64xf32>
    %c1_86 = arith.constant 1 : index
    %c0_87 = arith.constant 0 : index
    %c0_88 = arith.constant 0 : index
    %210 = vector.load %arg6[%c1_86, %c0_87, %c0_88] : memref<2x32x64xf32, #tpu.memory_space<vmem>>, vector<1x32x64xf32>
    %211 = vector.shape_cast %210 : vector<1x32x64xf32> to vector<32x64xf32>
    %c1_89 = arith.constant 1 : index
    %c0_90 = arith.constant 0 : index
    %c0_91 = arith.constant 0 : index
    %212 = vector.load %arg7[%c1_89, %c0_90, %c0_91] : memref<2x64x32xf32, #tpu.memory_space<vmem>>, vector<1x64x32xf32>
    %213 = vector.shape_cast %212 : vector<1x64x32xf32> to vector<64x32xf32>
    %214 = vector.extract_strided_slice %207 {offsets = [0, 0, 0], sizes = [1, 32, 32], strides = [1, 1, 1]} : vector<4x32x32xf32> to vector<1x32x32xf32>
    %215 = vector.shape_cast %214 : vector<1x32x32xf32> to vector<32x32xf32>
    %cst_92 = arith.constant dense<0.000000e+00> : vector<10x32xf32>
    %216 = tpu.matmul %205, %215, %cst_92 {dimension_numbers = #tpu.dot_dimension_numbers<[1], [0], [0], [1], [0, 0, 1, 1], [], []>} : vector<10x32xf32>, vector<32x32xf32>, vector<10x32xf32> -> vector<10x32xf32>
    %217 = vector.extract_strided_slice %209 {offsets = [0, 0], sizes = [1, 32], strides = [1, 1]} : vector<10x64xf32> to vector<1x32xf32>
    %218 = vector.shape_cast %217 : vector<1x32xf32> to vector<32xf32>
    %219 = vector.shape_cast %218 : vector<32xf32> to vector<1x32xf32>
    %220 = vector.broadcast %219 : vector<1x32xf32> to vector<10x32xf32>
    %221 = arith.addf %216, %220 : vector<10x32xf32>
    %222 = vector.extract_strided_slice %207 {offsets = [1, 0, 0], sizes = [1, 32, 32], strides = [1, 1, 1]} : vector<4x32x32xf32> to vector<1x32x32xf32>
    %223 = vector.shape_cast %222 : vector<1x32x32xf32> to vector<32x32xf32>
    %cst_93 = arith.constant dense<0.000000e+00> : vector<10x32xf32>
    %224 = tpu.matmul %205, %223, %cst_93 {dimension_numbers = #tpu.dot_dimension_numbers<[1], [0], [0], [1], [0, 0, 1, 1], [], []>} : vector<10x32xf32>, vector<32x32xf32>, vector<10x32xf32> -> vector<10x32xf32>
    %225 = vector.extract_strided_slice %209 {offsets = [1, 0], sizes = [1, 32], strides = [1, 1]} : vector<10x64xf32> to vector<1x32xf32>
    %226 = vector.shape_cast %225 : vector<1x32xf32> to vector<32xf32>
    %227 = vector.shape_cast %226 : vector<32xf32> to vector<1x32xf32>
    %228 = vector.broadcast %227 : vector<1x32xf32> to vector<10x32xf32>
    %229 = arith.addf %224, %228 : vector<10x32xf32>
    %230 = vector.extract_strided_slice %207 {offsets = [2, 0, 0], sizes = [1, 32, 32], strides = [1, 1, 1]} : vector<4x32x32xf32> to vector<1x32x32xf32>
    %231 = vector.shape_cast %230 : vector<1x32x32xf32> to vector<32x32xf32>
    %cst_94 = arith.constant dense<0.000000e+00> : vector<10x32xf32>
    %232 = tpu.matmul %205, %231, %cst_94 {dimension_numbers = #tpu.dot_dimension_numbers<[1], [0], [0], [1], [0, 0, 1, 1], [], []>} : vector<10x32xf32>, vector<32x32xf32>, vector<10x32xf32> -> vector<10x32xf32>
    %233 = vector.extract_strided_slice %209 {offsets = [2, 0], sizes = [1, 32], strides = [1, 1]} : vector<10x64xf32> to vector<1x32xf32>
    %234 = vector.shape_cast %233 : vector<1x32xf32> to vector<32xf32>
    %235 = vector.shape_cast %234 : vector<32xf32> to vector<1x32xf32>
    %236 = vector.broadcast %235 : vector<1x32xf32> to vector<10x32xf32>
    %237 = arith.addf %232, %236 : vector<10x32xf32>
    %cst_95 = arith.constant dense<0.000000e+00> : vector<10x10xf32>
    %238 = tpu.matmul %221, %229, %cst_95 {dimension_numbers = #tpu.dot_dimension_numbers<[1], [1], [0], [0], [0, 0, 1, 0], [], []>} : vector<10x32xf32>, vector<10x32xf32>, vector<10x10xf32> -> vector<10x10xf32>
    %cst_96 = arith.constant dense<0xFF800000> : vector<10xf32>
    %239 = vector.multi_reduction <maximumf>, %238, %cst_96 [1] : vector<10x10xf32> to vector<10xf32>
    %240 = vector.shape_cast %239 : vector<10xf32> to vector<10x1xf32>
    %241 = vector.broadcast %240 : vector<10x1xf32> to vector<10x10xf32>
    %242 = arith.subf %238, %241 : vector<10x10xf32>
    %243 = math.exp %242 : vector<10x10xf32>
    %cst_97 = arith.constant dense<0.000000e+00> : vector<10xf32>
    %244 = vector.multi_reduction <add>, %243, %cst_97 [1] : vector<10x10xf32> to vector<10xf32>
    %245 = vector.shape_cast %244 : vector<10xf32> to vector<10x1xf32>
    %246 = tpu.reciprocal %245 {approx = true} : vector<10x1xf32> -> vector<10x1xf32>
    %247 = vector.broadcast %246 : vector<10x1xf32> to vector<10x10xf32>
    %248 = arith.mulf %243, %247 : vector<10x10xf32>
    %cst_98 = arith.constant dense<0.000000e+00> : vector<10x32xf32>
    %249 = tpu.matmul %248, %237, %cst_98 {dimension_numbers = #tpu.dot_dimension_numbers<[1], [0], [0], [1], [0, 0, 1, 1], [], []>} : vector<10x10xf32>, vector<10x32xf32>, vector<10x32xf32> -> vector<10x32xf32>
    %250 = vector.extract_strided_slice %207 {offsets = [3, 0, 0], sizes = [1, 32, 32], strides = [1, 1, 1]} : vector<4x32x32xf32> to vector<1x32x32xf32>
    %251 = vector.shape_cast %250 : vector<1x32x32xf32> to vector<32x32xf32>
    %cst_99 = arith.constant dense<0.000000e+00> : vector<10x32xf32>
    %252 = tpu.matmul %249, %251, %cst_99 {dimension_numbers = #tpu.dot_dimension_numbers<[1], [0], [0], [1], [0, 0, 1, 1], [], []>} : vector<10x32xf32>, vector<32x32xf32>, vector<10x32xf32> -> vector<10x32xf32>
    %253 = vector.extract_strided_slice %209 {offsets = [3, 0], sizes = [1, 32], strides = [1, 1]} : vector<10x64xf32> to vector<1x32xf32>
    %254 = vector.shape_cast %253 : vector<1x32xf32> to vector<32xf32>
    %255 = vector.shape_cast %254 : vector<32xf32> to vector<1x32xf32>
    %256 = vector.broadcast %255 : vector<1x32xf32> to vector<10x32xf32>
    %257 = arith.addf %252, %256 : vector<10x32xf32>
    %258 = arith.addf %205, %257 : vector<10x32xf32>
    %259 = vector.extract_strided_slice %209 {offsets = [4, 0], sizes = [1, 32], strides = [1, 1]} : vector<10x64xf32> to vector<1x32xf32>
    %260 = vector.shape_cast %259 : vector<1x32xf32> to vector<32xf32>
    %261 = vector.extract_strided_slice %209 {offsets = [5, 0], sizes = [1, 32], strides = [1, 1]} : vector<10x64xf32> to vector<1x32xf32>
    %262 = vector.shape_cast %261 : vector<1x32xf32> to vector<32xf32>
    %cst_100 = arith.constant dense<0.000000e+00> : vector<10xf32>
    %263 = vector.multi_reduction <add>, %258, %cst_100 [1] : vector<10x32xf32> to vector<10xf32>
    %264 = vector.shape_cast %263 : vector<10xf32> to vector<10x1xf32>
    %cst_101 = arith.constant 3.200000e+01 : f32
    %265 = vector.broadcast %cst_101 : f32 to vector<10x1xf32>
    %266 = arith.divf %264, %265 : vector<10x1xf32>
    %267 = vector.broadcast %266 : vector<10x1xf32> to vector<10x32xf32>
    %268 = arith.subf %258, %267 : vector<10x32xf32>
    %269 = arith.mulf %268, %268 : vector<10x32xf32>
    %cst_102 = arith.constant dense<0.000000e+00> : vector<10xf32>
    %270 = vector.multi_reduction <add>, %269, %cst_102 [1] : vector<10x32xf32> to vector<10xf32>
    %271 = vector.shape_cast %270 : vector<10xf32> to vector<10x1xf32>
    %cst_103 = arith.constant 3.200000e+01 : f32
    %272 = vector.broadcast %cst_103 : f32 to vector<10x1xf32>
    %273 = arith.divf %271, %272 : vector<10x1xf32>
    %274 = vector.broadcast %266 : vector<10x1xf32> to vector<10x32xf32>
    %275 = arith.subf %258, %274 : vector<10x32xf32>
    %cst_104 = arith.constant 9.99999996E-13 : f32
    %276 = vector.broadcast %cst_104 : f32 to vector<10x1xf32>
    %277 = arith.addf %273, %276 : vector<10x1xf32>
    %278 = math.rsqrt %277 : vector<10x1xf32>
    %279 = vector.broadcast %278 : vector<10x1xf32> to vector<10x32xf32>
    %280 = arith.mulf %275, %279 : vector<10x32xf32>
    %281 = vector.shape_cast %260 : vector<32xf32> to vector<1x32xf32>
    %282 = vector.broadcast %281 : vector<1x32xf32> to vector<10x32xf32>
    %283 = arith.mulf %280, %282 : vector<10x32xf32>
    %284 = vector.shape_cast %262 : vector<32xf32> to vector<1x32xf32>
    %285 = vector.broadcast %284 : vector<1x32xf32> to vector<10x32xf32>
    %286 = arith.addf %283, %285 : vector<10x32xf32>
    %cst_105 = arith.constant dense<0.000000e+00> : vector<10x64xf32>
    %287 = tpu.matmul %286, %211, %cst_105 {dimension_numbers = #tpu.dot_dimension_numbers<[1], [0], [0], [1], [0, 0, 1, 1], [], []>} : vector<10x32xf32>, vector<32x64xf32>, vector<10x64xf32> -> vector<10x64xf32>
    %288 = vector.extract_strided_slice %209 {offsets = [9, 0], sizes = [1, 64], strides = [1, 1]} : vector<10x64xf32> to vector<1x64xf32>
    %289 = vector.shape_cast %288 : vector<1x64xf32> to vector<64xf32>
    %290 = vector.shape_cast %289 : vector<64xf32> to vector<1x64xf32>
    %291 = vector.broadcast %290 : vector<1x64xf32> to vector<10x64xf32>
    %292 = arith.addf %287, %291 : vector<10x64xf32>
    %cst_106 = arith.constant 5.000000e-01 : f32
    %293 = vector.broadcast %cst_106 : f32 to vector<10x64xf32>
    %294 = arith.mulf %293, %292 : vector<10x64xf32>
    %cst_107 = arith.constant 4.471500e-02 : f32
    %295 = vector.broadcast %cst_107 : f32 to vector<10x64xf32>
    %296 = arith.mulf %295, %292 : vector<10x64xf32>
    %297 = arith.mulf %296, %292 : vector<10x64xf32>
    %298 = arith.mulf %297, %292 : vector<10x64xf32>
    %299 = arith.addf %292, %298 : vector<10x64xf32>
    %cst_108 = arith.constant 0.797884583 : f32
    %300 = vector.broadcast %cst_108 : f32 to vector<10x64xf32>
    %301 = arith.mulf %300, %299 : vector<10x64xf32>
    %302 = math.tanh %301 : vector<10x64xf32>
    %cst_109 = arith.constant 1.000000e+00 : f32
    %303 = vector.broadcast %cst_109 : f32 to vector<10x64xf32>
    %304 = arith.addf %303, %302 : vector<10x64xf32>
    %305 = arith.mulf %294, %304 : vector<10x64xf32>
    %cst_110 = arith.constant dense<0.000000e+00> : vector<10x32xf32>
    %306 = tpu.matmul %305, %213, %cst_110 {dimension_numbers = #tpu.dot_dimension_numbers<[1], [0], [0], [1], [0, 0, 1, 1], [], []>} : vector<10x64xf32>, vector<64x32xf32>, vector<10x32xf32> -> vector<10x32xf32>
    %307 = vector.extract_strided_slice %209 {offsets = [6, 0], sizes = [1, 32], strides = [1, 1]} : vector<10x64xf32> to vector<1x32xf32>
    %308 = vector.shape_cast %307 : vector<1x32xf32> to vector<32xf32>
    %309 = vector.shape_cast %308 : vector<32xf32> to vector<1x32xf32>
    %310 = vector.broadcast %309 : vector<1x32xf32> to vector<10x32xf32>
    %311 = arith.addf %306, %310 : vector<10x32xf32>
    %312 = arith.addf %286, %311 : vector<10x32xf32>
    %313 = vector.extract_strided_slice %209 {offsets = [7, 0], sizes = [1, 32], strides = [1, 1]} : vector<10x64xf32> to vector<1x32xf32>
    %314 = vector.shape_cast %313 : vector<1x32xf32> to vector<32xf32>
    %315 = vector.extract_strided_slice %209 {offsets = [8, 0], sizes = [1, 32], strides = [1, 1]} : vector<10x64xf32> to vector<1x32xf32>
    %316 = vector.shape_cast %315 : vector<1x32xf32> to vector<32xf32>
    %cst_111 = arith.constant dense<0.000000e+00> : vector<10xf32>
    %317 = vector.multi_reduction <add>, %312, %cst_111 [1] : vector<10x32xf32> to vector<10xf32>
    %318 = vector.shape_cast %317 : vector<10xf32> to vector<10x1xf32>
    %cst_112 = arith.constant 3.200000e+01 : f32
    %319 = vector.broadcast %cst_112 : f32 to vector<10x1xf32>
    %320 = arith.divf %318, %319 : vector<10x1xf32>
    %321 = vector.broadcast %320 : vector<10x1xf32> to vector<10x32xf32>
    %322 = arith.subf %312, %321 : vector<10x32xf32>
    %323 = arith.mulf %322, %322 : vector<10x32xf32>
    %cst_113 = arith.constant dense<0.000000e+00> : vector<10xf32>
    %324 = vector.multi_reduction <add>, %323, %cst_113 [1] : vector<10x32xf32> to vector<10xf32>
    %325 = vector.shape_cast %324 : vector<10xf32> to vector<10x1xf32>
    %cst_114 = arith.constant 3.200000e+01 : f32
    %326 = vector.broadcast %cst_114 : f32 to vector<10x1xf32>
    %327 = arith.divf %325, %326 : vector<10x1xf32>
    %328 = vector.broadcast %320 : vector<10x1xf32> to vector<10x32xf32>
    %329 = arith.subf %312, %328 : vector<10x32xf32>
    %cst_115 = arith.constant 9.99999996E-13 : f32
    %330 = vector.broadcast %cst_115 : f32 to vector<10x1xf32>
    %331 = arith.addf %327, %330 : vector<10x1xf32>
    %332 = math.rsqrt %331 : vector<10x1xf32>
    %333 = vector.broadcast %332 : vector<10x1xf32> to vector<10x32xf32>
    %334 = arith.mulf %329, %333 : vector<10x32xf32>
    %335 = vector.shape_cast %314 : vector<32xf32> to vector<1x32xf32>
    %336 = vector.broadcast %335 : vector<1x32xf32> to vector<10x32xf32>
    %337 = arith.mulf %334, %336 : vector<10x32xf32>
    %338 = vector.shape_cast %316 : vector<32xf32> to vector<1x32xf32>
    %339 = vector.broadcast %338 : vector<1x32xf32> to vector<10x32xf32>
    %340 = arith.addf %337, %339 : vector<10x32xf32>
    %341 = vector.extract_strided_slice %340 {offsets = [1, 0], sizes = [7, 32], strides = [1, 1]} : vector<10x32xf32> to vector<7x32xf32>
    %c0_116 = arith.constant 0 : index
    %c0_117 = arith.constant 0 : index
    %342 = vector.load %arg9[%c0_116, %c0_117] : memref<32x128xf32, #tpu.memory_space<vmem>>, vector<32x128xf32>
    %cst_118 = arith.constant dense<0.000000e+00> : vector<7x128xf32>
    %343 = tpu.matmul %341, %342, %cst_118 {dimension_numbers = #tpu.dot_dimension_numbers<[1], [0], [0], [1], [0, 0, 1, 1], [], []>} : vector<7x32xf32>, vector<32x128xf32>, vector<7x128xf32> -> vector<7x128xf32>
    %c0_119 = arith.constant 0 : index
    %c0_120 = arith.constant 0 : index
    %344 = vector.load %arg10[%c0_119, %c0_120] : memref<1x128xf32, #tpu.memory_space<vmem>>, vector<1x128xf32>
    %345 = vector.broadcast %344 : vector<1x128xf32> to vector<7x128xf32>
    %346 = arith.addf %343, %345 : vector<7x128xf32>
    %c0_121 = arith.constant 0 : index
    %c0_122 = arith.constant 0 : index
    %347 = vector.load %arg11[%c0_121, %c0_122] : memref<7x128xf32, #tpu.memory_space<vmem>>, vector<7x128xf32>
    tpu.vector_store %arg11[%c0_121, %c0_122], %346 {strides = array<i32>} : memref<7x128xf32, #tpu.memory_space<vmem>>, vector<7x128xf32>,
    %348 = tpu.iota {dimensions = array<i32: 1>} : vector<7x128xi32>
    %c2_i32 = arith.constant 2 : i32
    %349 = vector.broadcast %c2_i32 : i32 to vector<7x128xi32>
    %350 = arith.cmpi slt, %348, %349 : vector<7x128xi32>
    %cst_123 = arith.constant -1.000000e+30 : f32
    %351 = vector.broadcast %cst_123 : f32 to vector<7x128xf32>
    %352 = arith.select %350, %346, %351 : vector<7x128xi1>, vector<7x128xf32>
    %cst_124 = arith.constant dense<0xFF800000> : vector<7xf32>
    %353 = vector.multi_reduction <maximumf>, %352, %cst_124 [1] : vector<7x128xf32> to vector<7xf32>
    %354 = vector.shape_cast %353 : vector<7xf32> to vector<7x1xf32>
    %355 = vector.broadcast %354 : vector<7x1xf32> to vector<7x128xf32>
    %356 = arith.subf %352, %355 : vector<7x128xf32>
    %357 = math.exp %356 : vector<7x128xf32>
    %cst_125 = arith.constant 0.000000e+00 : f32
    %358 = vector.broadcast %cst_125 : f32 to vector<7x128xf32>
    %359 = arith.select %350, %357, %358 : vector<7x128xi1>, vector<7x128xf32>
    %cst_126 = arith.constant dense<0.000000e+00> : vector<7xf32>
    %360 = vector.multi_reduction <add>, %359, %cst_126 [1] : vector<7x128xf32> to vector<7xf32>
    %361 = vector.shape_cast %360 : vector<7xf32> to vector<7x1xf32>
    %362 = math.log %361 : vector<7x1xf32>
    %363 = arith.addf %354, %362 : vector<7x1xf32>
    %c0_127 = arith.constant 0 : index
    %c0_128 = arith.constant 0 : index
    %364 = vector.load %arg1[%c0_127, %c0_128] : memref<7x1xi32, #tpu.memory_space<vmem>>, vector<7x1xi32>
    %365 = vector.broadcast %364 : vector<7x1xi32> to vector<7x128xi32>
    %366 = arith.cmpi eq, %348, %365 : vector<7x128xi32>
    %367 = arith.extui %366 : vector<7x128xi1> to vector<7x128xi32>
    %368 = arith.sitofp %367 : vector<7x128xi32> to vector<7x128xf32>
    %369 = arith.mulf %346, %368 : vector<7x128xf32>
    %cst_129 = arith.constant dense<0.000000e+00> : vector<7xf32>
    %370 = vector.multi_reduction <add>, %369, %cst_129 [1] : vector<7x128xf32> to vector<7xf32>
    %371 = vector.shape_cast %370 : vector<7xf32> to vector<7x1xf32>
    %372 = arith.subf %363, %371 : vector<7x1xf32>
    %373 = vector.shape_cast %372 : vector<7x1xf32> to vector<1x7x1xf32>
    %cst_130 = arith.constant dense<0.000000e+00> : vector<1xf32>
    %374 = vector.multi_reduction <add>, %373, %cst_130 [1, 2] : vector<1x7x1xf32> to vector<1xf32>
    %375 = vector.shape_cast %374 : vector<1xf32> to vector<1x1x1xf32>
    %376 = vector.extract %375[0, 0, 0] : f32 from vector<1x1x1xf32>
    %cst_131 = arith.constant 0.142857149 : f32
    %377 = arith.mulf %376, %cst_131 : f32
    %c0_132 = arith.constant 0 : index
    %c0_133 = arith.constant 0 : index
    %378 = memref.load %arg12[%c0_132, %c0_133] : memref<1x1xf32, #tpu.memory_space<smem>>
    memref.store %377, %arg12[%c0_132, %c0_133] : memref<1x1xf32, #tpu.memory_space<smem>>
    return
  }
}

</mosaic_0001>

<bundles_post_ra>
// kernel: tpu_custom_call.1
= control target key start
LH: loop header
LB: loop body
LE: loop exit
PB: predicated region body
PF: predicated region fallthrough
CT: control target
= control target key end

     0   :  { %18 = vsyncpa [#allocation6], 0  ;;  %s1773_s0 = inlined_call_operand.vmem [shape: s32[10], index: 0, kind: input, shape index: {}]   ;;  %s1774_s1 = inlined_call_operand.vmem [shape: s32[7,1], index: 1, kind: input, shape index: {}]   ;;  %s1775_s2 = inlined_call_operand.vmem [shape: f32[128,32], index: 2, kind: input, shape index: {}]   ;;  %s1776_s3 = inlined_call_operand.vmem [shape: f32[64,32], index: 3, kind: input, shape index: {}]   ;;  %s1777_s4 = inlined_call_operand.vmem [shape: f32[2,32], index: 4, kind: input, shape index: {}]   ;;  %s1778_s5 = inlined_call_operand.vmem [shape: f32[2,4,32,32], index: 5, kind: input, shape index: {}]   ;;  %s1779_s6 = inlined_call_operand.vmem [shape: f32[2,32,64], index: 6, kind: input, shape index: {}]   ;;  %s1780_s7 = inlined_call_operand.vmem [shape: f32[2,64,32], index: 7, kind: input, shape index: {}]   ;;  %s1781_s8 = inlined_call_operand.vmem [shape: f32[2,10,64], index: 8, kind: input, shape index: {}]   ;;  %s1782_s9 = inlined_call_operand.vmem [shape: f32[32,128], index: 9, kind: input, shape index: {}]   ;;  %s1783_s10 = inlined_call_operand.vmem [shape: f32[1,128], index: 10, kind: input, shape index: {}]   ;;  %s1784_s11 = inlined_call_operand.hbm [shape: f32[7,128], index: 11, kind: output, shape index: {0}]   ;;  %s1785_s12 = inlined_call_operand.hbm [shape: f32[1,1], index: 12, kind: output, shape index: {1}]  }
   0x1   :  { %19 = vsyncpa [#allocation4], 0 }
   0x2   :  { %20 = vsyncpa [#allocation5], 0  ;;  %s26_s23 = sshll.u32 %s1773_s0, 4  ;;  %s1275_s24 = smov [#allocation3]   ;;  %s27_s23 = int_to_ptr.vmem [resolvable:$true] %s26_s23 }
   0x3   :  { %29 = dma.vmem_to_smem %s27_s23, 16, %s1275_s24, [#allocation6]  }
   0x4   :  { %1269 = dma.done.wait [#allocation6], 16  }
   0x5   :  { %1270 = vsyncadd [#allocation6], 4294967280 }
   0x6   :  { %54 = sfence }
   0x7   :  { %s55_s25 = sld [smem:[#allocation3]]  ;;  %vm58_vm0 = vcmask 253952   ;;  %v98_v10 = vld [vmem:[%s1776_s3] sm:$0xff]  ;;  %vm104_vm1 = vcmask 261120   ;;  %v99_v14 = vld [vmem:[%s1776_s3 + $0x8] sm:$0x3] }
   0x8   :  { %s1082_s26 = sld [smem:[#allocation3 + $0x1]]  ;;  %vm108_vm2 = vcmask 254976   ;;  %v1276_v18 = vmov 32.0   ;;  %v166_v35 = vld [vmem:[%s1778_s5 + $0x18] sm:$0xff]  ;;  %v165_v38 = vld [vmem:[%s1778_s5 + $0x10] sm:$0xff]  ;;  %v164_v41 = vld [vmem:[%s1778_s5 + $0x8] sm:$0xff] }
   0x9   :  { %s1083_s27 = sld [smem:[#allocation3 + $0x2]]  ;;  %1173 = vrcp.f32 %v1276_v18  ;;  %v170_v36 = vld [vmem:[%s1778_s5 + $0x38] sm:$0xff]  ;;  %212 = vmatpush.msra.mxu0 %v166_v35  ;;  %v169_v39 = vld [vmem:[%s1778_s5 + $0x30] sm:$0xff]  ;;  %v168_v42 = vld [vmem:[%s1778_s5 + $0x28] sm:$0xff]  ;;  %vm336_vm10 = vcmask 1041408   ;;  %vm306_vm11 = vcmask 80896  }
   0xa   :  { %s1084_s28 = sld [smem:[#allocation3 + $0x3]]  ;;  %v174_v37 = vld [vmem:[%s1778_s5 + $0x58] sm:$0xff]  ;;  %236 = vmatpush.msra.mxu1 %v170_v36  ;;  %v173_v40 = vld [vmem:[%s1778_s5 + $0x50] sm:$0xff]  ;;  %v172_v43 = vld [vmem:[%s1778_s5 + $0x48] sm:$0xff]  ;;  %vm310_vm12 = vcmask 74752   ;;  %s1056_s17 = sshll.u32 %s1785_s12, 4  ;;  %s1057_s17 = int_to_ptr.hbm [resolvable:$true] %s1056_s17 }
   0xb   :  { %s1085_s29 = sld [smem:[#allocation3 + $0x4]]  ;;  %260 = vmatpush.msra.mxu2 %v174_v37  ;;  %213 = vmatpush.msra.mxu0 %v165_v38  ;;  %v163_v44 = vld [vmem:[%s1778_s5] sm:$0xff] }
   0xc   :  { %s1086_s30 = sld [smem:[#allocation3 + $0x5]]  ;;  %237 = vmatpush.msra.mxu1 %v169_v39  ;;  %v167_v45 = vld [vmem:[%s1778_s5 + $0x20] sm:$0xff] }
   0xd   :  { %s56_s15 = scalar_lea.vmem %s1775_s2, %s55_s25  ;;  %s1087_s16 = sld [smem:[#allocation3 + $0x6]]  ;;  %261 = vmatpush.msra.mxu2 %v173_v40  ;;  %214 = vmatpush.msra.mxu0 %v164_v41  ;;  %v171_v46 = vld [vmem:[%s1778_s5 + $0x40] sm:$0xff] }
   0xe   :  { %v57_v0 = vld [vmem:[%s56_s15] sm:$0x1]  ;;  %s61_s18 = scalar_lea.vmem %s1775_s2, %s1082_s26  ;;  %s1088_s19 = sld [smem:[#allocation3 + $0x7]]  ;;  %238 = vmatpush.msra.mxu1 %v168_v42  ;;  %v178_v42 = vld [vmem:[%s1778_s5 + $0x78] sm:$0xff] }
   0xf   :  { %59 = vst.msk [vmem:[#allocation2] sm:$0x1] %vm58_vm0, %v57_v0  ;;  %v62_v1 = vld [vmem:[%s61_s18] sm:$0x1]  ;;  %s65_s22 = scalar_lea.vmem %s1775_s2, %s1083_s27  ;;  %s1089_s23 = sld [smem:[#allocation3 + $0x8]]  ;;  %v1174_v19 = vpop.eup %1173  ;;  %262 = vmatpush.msra.mxu2 %v172_v43  ;;  %215 = vmatpush.msra.mxu0 %v163_v44  ;;  %v177_v43 = vld [vmem:[%s1778_s5 + $0x70] sm:$0xff] }
  0x10   :  { %63 = vst.msk [vmem:[#allocation2 + $0x1] sm:$0x1] %vm58_vm0, %v62_v1  ;;  %v66_v2 = vld [vmem:[%s65_s22] sm:$0x1]  ;;  %s69_s13 = scalar_lea.vmem %s1775_s2, %s1084_s28  ;;  %s1090_s14 = sld [smem:[#allocation3 + $0x9]]  ;;  %v113_v20 = vmul.f32 32.0, %v1174_v19  ;;  %vm117_vm3 = vweird.f32 %v1174_v19  ;;  %239 = vmatpush.msra.mxu1 %v167_v45 }
  0x11   :  { %67 = vst.msk [vmem:[#allocation2 + $0x2] sm:$0x1] %vm58_vm0, %v66_v2  ;;  %v70_v3 = vld [vmem:[%s69_s13] sm:$0x1]  ;;  %s73_s0 = scalar_lea.vmem %s1775_s2, %s1085_s29  ;;  %263 = vmatpush.msra.mxu2 %v171_v46  ;;  %v1171_v1 = vld [vmem:[%s1777_s4 + $0x1] ss:$0 sm:$0xff] }
  0x12   :  { %71 = vst.msk [vmem:[#allocation2 + $0x3] sm:$0x1] %vm58_vm0, %v70_v3  ;;  %v74_v4 = vld [vmem:[%s73_s0] sm:$0x1]  ;;  %s77_s18 = scalar_lea.vmem %s1775_s2, %s1086_s30  ;;  %v114_v21 = vsub.f32 1.0, %v113_v20  ;;  %382 = vmatpush.msrb.mxu1 %v178_v42  ;;  %v176_v44 = vld [vmem:[%s1778_s5 + $0x68] sm:$0xff] }
  0x13   :  { %75 = vst.msk [vmem:[#allocation2 + $0x4] sm:$0x1] %vm58_vm0, %v74_v4  ;;  %v78_v5 = vld [vmem:[%s77_s18] sm:$0x1]  ;;  %s81_s21 = scalar_lea.vmem %s1775_s2, %s1087_s16 }
  0x14   :  { %79 = vst.msk [vmem:[#allocation2 + $0x5] sm:$0x1] %vm58_vm0, %v78_v5  ;;  %v82_v6 = vld [vmem:[%s81_s21] sm:$0x1]  ;;  %s85_s29 = scalar_lea.vmem %s1775_s2, %s1088_s19  ;;  %v115_v22 = vmul.f32 %v1174_v19, %v114_v21  ;;  %383 = vmatpush.msrb.mxu1 %v177_v43  ;;  %v192_v43 = vld [vmem:[%s1780_s7 + $0x38] sm:$0xff] }
  0x15   :  { %83 = vst.msk [vmem:[#allocation2 + $0x6] sm:$0x1] %vm58_vm0, %v82_v6  ;;  %v86_v7 = vld [vmem:[%s85_s29] sm:$0x1]  ;;  %s89_s30 = scalar_lea.vmem %s1775_s2, %s1089_s23 }
  0x16   :  { %87 = vst.msk [vmem:[#allocation2 + $0x7] sm:$0x1] %vm58_vm0, %v86_v7  ;;  %v90_v8 = vld [vmem:[%s89_s30] sm:$0x1]  ;;  %s93_s16 = scalar_lea.vmem %s1775_s2, %s1090_s14  ;;  %v116_v23 = vadd.f32 %v1174_v19, %v115_v22  ;;  %384 = vmatpush.msrb.mxu1 %v176_v44  ;;  %v191_v44 = vld [vmem:[%s1780_s7 + $0x30] sm:$0xff]  ;;  %s1047_s2 = sshll.u32 %s1784_s11, 4  ;;  %s1048_s2 = int_to_ptr.hbm [resolvable:$true] %s1047_s2 }
  0x17   :  { %91 = vst.msk [vmem:[#allocation2 + $0x8] sm:$0x1] %vm58_vm0, %v90_v8  ;;  %v94_v9 = vld [vmem:[%s93_s16] sm:$0x1]  ;;  %s1280_s11 = smov [#allocation8]  }
  0x18   :  { %95 = vst.msk [vmem:[#allocation2 + $0x9] sm:$0x1] %vm58_vm0, %v94_v9  ;;  %v1397_v24 = vsel %vm117_vm3, %v1174_v19, %v116_v23  ;;  %v1170_v61 = vld [vmem:[%s1777_s4] ss:$0 sm:$0xff] }
  0x1d   :  { %v96_v11 = vld [vmem:[#allocation2] sm:$0xff] }
  0x1e   :  { %v100_v12 = vadd.f32 %v98_v10, %v96_v11 }
  0x1f   :  { %v97_v13 = vld [vmem:[#allocation2 + $0x8] sm:$0x3] }
  0x20   :  { %v105_v15 = vsel %vm104_vm1, %v100_v12, 0.0  ;;  %v101_v16 = vadd.f32 %v99_v14, %v97_v13 }
  0x21   :  { %106 = vadd.xlane.f32.xlu0 %v105_v15 }
  0x22   :  { %v109_v17 = vsel %vm108_vm2, %v101_v16, 0.0 }
  0x29   :  { %110 = vadd.xlane.f32.xlu0 %v109_v17 }
  0x94   :  { %v107_v25 = vpop.xlane.xlu0 %106 }
  0x95   :  { %v119_v26 = vmul.f32 %v1397_v24, %v107_v25 }
  0x97   :  { %v121_v27 = vsub.f32 %v100_v12, %v119_v26  ;;  %v1471_v12 = vld [vmem:[%s1781_s8] sm:$0xff] }
  0x98   :  { %v223_v13 = vperm.slane %v1471_v12, 1  ;;  %v193_v18 = vperm.slane %v1471_v12, 0  ;;  %v247_v20 = vperm.slane %v1471_v12, 2 }
  0x99   :  { %v123_v28 = vmul.f32 %v121_v27, %v121_v27 }
  0x9b   :  { %v125_v29 = vsel %vm104_vm1, %v123_v28, 0.0 }
  0x9c   :  { %126 = vadd.xlane.f32.xlu1 %v125_v29  ;;  %v111_v30 = vpop.xlane.xlu0 %110 }
  0x9d   :  { %v120_v31 = vmul.f32 %v1397_v24, %v111_v30 }
  0x9f   :  { %v1402_v32 = vsub.f32 %v101_v16, %v120_v31 }
  0xa1   :  { %v124_v33 = vmul.f32 %v1402_v32, %v1402_v32 }
  0xa3   :  { %v128_v34 = vsel %vm108_vm2, %v124_v33, 0.0 }
  0xa4   :  { %129 = vadd.xlane.f32.xlu1 %v128_v34 }
 0x10f   :  { %v127_v47 = vpop.xlane.xlu1 %126 }
 0x110   :  { %v131_v48 = vmul.f32 %v127_v47, %v1397_v24 }
 0x112   :  { %v133_v49 = vadd.f32 1e-12, %v131_v48 }
 0x114   :  { %1175 = vrsqrt.f32 %v133_v49  ;;  %vm141_vm5 = vweird.f32 %v133_v49 }
 0x117   :  { %v130_v50 = vpop.xlane.xlu1 %129 }
 0x118   :  { %v132_v51 = vmul.f32 %v130_v50, %v1397_v24 }
 0x11a   :  { %v1176_v52 = vpop.eup %1175  ;;  %v134_v53 = vadd.f32 1e-12, %v132_v51  ;;  %v175_v51 = vld [vmem:[%s1778_s5 + $0x60] sm:$0xff] }
 0x11b   :  { %v136_v54 = vmul.f32 %v1176_v52, %v133_v49  ;;  %vm142_vm4 = vweird.f32 %v1176_v52  ;;  %385 = vmatpush.msrb.mxu1 %v175_v51  ;;  %v1555_v51 = vld [vmem:[%s1781_s8 + $0x8] sm:$0x3] }
 0x11c   :  { %1177 = vrsqrt.f32 %v134_v53  ;;  %vm143_vm6 = vmor %vm141_vm5, %vm142_vm4  ;;  %vm151_vm8 = vweird.f32 %v134_v53  ;;  %vm494_vm5 = vcmask 523264  }
 0x11d   :  { %v137_v55 = vmul.f32 %v1176_v52, %v136_v54  ;;  %v363_v54 = vperm.slane %v1471_v12, 3 }
 0x11f   :  { %v138_v56 = vmul.f32 0.5, %v137_v55 }
 0x121   :  { %v139_v57 = vsub.f32 1.5, %v138_v56 }
 0x122   :  { %v1178_v58 = vpop.eup %1177 }
 0x123   :  { %v140_v59 = vmul.f32 %v1176_v52, %v139_v57  ;;  %v146_v60 = vmul.f32 %v1178_v58, %v134_v53  ;;  %vm152_vm7 = vweird.f32 %v1178_v58 }
 0x124   :  { %vm153_vm9 = vmor %vm151_vm8, %vm152_vm7 }
 0x125   :  { %v144_v62 = vsel %vm143_vm6, %v1176_v52, %v140_v59  ;;  %v147_v63 = vmul.f32 %v1178_v58, %v146_v60 }
 0x126   :  { %v155_v0 = vmul.f32 %v144_v62, %v121_v27 }
 0x127   :  { %v148_v2 = vmul.f32 0.5, %v147_v63 }
 0x128   :  { %v158_v3 = vmul.f32 %v1170_v61, %v155_v0 }
 0x129   :  { %v149_v4 = vsub.f32 1.5, %v148_v2 }
 0x12a   :  { %v1451_v5 = vadd.f32 %v1171_v1, %v158_v3 }
 0x12b   :  { %v150_v6 = vmul.f32 %v1178_v58, %v149_v4 }
 0x12c   :  { %1091 = vmatmul.msk.f32.vlgmr.msra.gmra.mxu0 %vm104_vm1, %v1451_v5  ;;  %1093 = vmatmul.msk.f32.vlgmr.msra.gmra.mxu1 %vm104_vm1, %v1451_v5 }
 0x12d   :  { %v154_v7 = vsel %vm153_vm9, %v1178_v58, %v150_v6  ;;  %1095 = vmatmul.msk.f32.vlgmr.msra.gmra.mxu2 %vm104_vm1, %v1451_v5 }
 0x12e   :  { %v156_v8 = vmul.f32 %v154_v7, %v1402_v32 }
 0x130   :  { %v159_v9 = vmul.f32 %v1170_v61, %v156_v8 }
 0x132   :  { %v1460_v10 = vadd.f32 %v1171_v1, %v159_v9  ;;  %v184_v9 = vld [vmem:[%s1779_s6 + $0x18] sm:$0xff] }
 0x133   :  { %464 = vmatpush.msrb.mxu2 %v184_v9 }
 0x134   :  { %1092 = vmatmul.msk.f32.gmra.mxu0 %vm104_vm1, %v1460_v10  ;;  %1094 = vmatmul.msk.f32.gmra.mxu1 %vm104_vm1, %v1460_v10 }
 0x135   :  { %1096 = vmatmul.msk.f32.gmra.mxu2 %vm104_vm1, %v1460_v10 }
 0x1a9   :  { %v241_v11 = vpop.f32.mrf.mxu1  ;;  %v217_v17 = vpop.f32.mrf.mxu0 }
 0x1aa   :  { %v242_v19 = vadd.f32 %v241_v11, %v223_v13  ;;  %v218_v22 = vadd.f32 %v217_v17, %v193_v18  ;;  %v182_v11 = vld [vmem:[%s1779_s6 + $0x8] sm:$0xff] }
 0x1b0   :  { %v265_v14 = vpop.f32.mrf.mxu2 }
 0x1b1   :  { %v244_v15 = vpop.f32.mrf.mxu1  ;;  %v266_v25 = vadd.f32 %v265_v14, %v247_v20  ;;  %v220_v26 = vpop.f32.mrf.mxu0 }
 0x1b2   :  { %v245_v16 = vadd.f32 %v244_v15, %v223_v13  ;;  %v221_v27 = vadd.f32 %v220_v26, %v193_v18  ;;  %v181_v13 = vld [vmem:[%s1779_s6] sm:$0xff] }
 0x1b4   :  { %1097 = vmatpush.xpose.msk.msra.mxu3 %vm104_vm1, %v245_v16 }
 0x1b8   :  { %v268_v21 = vpop.f32.mrf.mxu2  ;;  %1098 = vmatpush.xpose.msk.msra.mxu3 %vm104_vm1, %v242_v19 }
 0x1b9   :  { %v269_v23 = vadd.f32 %v268_v21, %v247_v20 }
 0x1bb   :  { %1101 = vmatpush.msk.msrb.mxu0 %vm336_vm10, %v269_v23  ;;  %1099 = vmatmul.msk.f32.vlgmr.msra.gmra.mxu3 %vm104_vm1, %v218_v22 }
 0x1bc   :  { %509 = vmatpush.msrb.mxu3 %v192_v43  ;;  %v1118_v43 = vld [vmem:[%s1778_s5 + $0xc0] sm:$0xff] }
 0x1bd   :  { %355 = vmatpush.msrb.mxu0 %v266_v25 }
 0x1be   :  { %510 = vmatpush.msrb.mxu3 %v191_v44 }
 0x1c3   :  { %1100 = vmatmul.msk.f32.gmra.mxu3 %vm104_vm1, %v221_v27 }
 0x23e   :  { %v300_v28 = vpop.f32.mrf.mxu3 }
 0x23f   :  { %v307_v29 = vsel %vm306_vm11, %v300_v28, -inf }
 0x240   :  { %308 = vmax.xlane.f32.xlu2 %v307_v29  ;;  %v439_v29 = vperm.slane %v1471_v12, 4 }
 0x246   :  { %v303_v30 = vpop.f32.mrf.mxu3 }
 0x247   :  { %v311_v31 = vsel %vm310_vm12, %v303_v30, -inf }
 0x248   :  { %312 = vmax.xlane.f32.xlu2 %v311_v31 }
 0x2b3   :  { %v309_v32 = vpop.xlane.xlu2 %308 }
 0x2b4   :  { %v314_v33 = vsub.f32 %v300_v28, %v309_v32 }
 0x2b6   :  { %v316_v34 = vmul.f32 1.442695, %v314_v33  ;;  %v442_v33 = vperm.slane %v1471_v12, 5 }
 0x2b8   :  { %1179 = vpow2.f32 %v316_v34 }
 0x2bb   :  { %v313_v35 = vpop.xlane.xlu2 %312 }
 0x2bc   :  { %v315_v36 = vsub.f32 %v303_v30, %v313_v35 }
 0x2be   :  { %v1180_v37 = vpop.eup %1179  ;;  %v318_v38 = vmul.f32 1.442695, %v315_v36 }
 0x2bf   :  { %v320_v39 = vsel %vm306_vm11, %v1180_v37, 0.0 }
 0x2c0   :  { %1181 = vpow2.f32 %v318_v38  ;;  %321 = vadd.xlane.f32.xlu0 %v320_v39 }
 0x2c6   :  { %v1182_v40 = vpop.eup %1181 }
 0x2c7   :  { %v323_v41 = vsel %vm310_vm12, %v1182_v40, 0.0 }
 0x2c8   :  { %324 = vadd.xlane.f32.xlu1 %v323_v41 }
 0x333   :  { %v322_v45 = vpop.xlane.xlu0 %321 }
 0x334   :  { %1183 = vrcp.f32 %v322_v45  ;;  %v190_v45 = vld [vmem:[%s1780_s7 + $0x28] sm:$0xff] }
 0x335   :  { %511 = vmatpush.msrb.mxu3 %v190_v45 }
 0x33a   :  { %v1184_v46 = vpop.eup %1183 }
 0x33b   :  { %v325_v47 = vpop.xlane.xlu1 %324  ;;  %v328_v48 = vmul.f32 %v1184_v46, %v1180_v37  ;;  %v189_v46 = vld [vmem:[%s1780_s7 + $0x20] sm:$0xff] }
 0x33c   :  { %1185 = vrcp.f32 %v325_v47  ;;  %v188_v47 = vld [vmem:[%s1780_s7 + $0x18] sm:$0xff]  ;;  %512 = vmatpush.msrb.mxu3 %v189_v46 }
 0x33d   :  { %1102 = vmatmul.msk.f32.vlgmr.msrb.gmra.mxu0 %vm306_vm11, %v328_v48  ;;  %v187_v48 = vld [vmem:[%s1780_s7 + $0x10] sm:$0xff] }
 0x33e   :  { %513 = vmatpush.msrb.mxu3 %v188_v47 }
 0x340   :  { %514 = vmatpush.msrb.mxu3 %v187_v48 }
 0x342   :  { %v1186_v49 = vpop.eup %1185 }
 0x343   :  { %v329_v50 = vmul.f32 %v1186_v49, %v1182_v40  ;;  %v186_v49 = vld [vmem:[%s1780_s7 + $0x8] sm:$0xff] }
 0x344   :  { %515 = vmatpush.msrb.mxu3 %v186_v49 }
 0x345   :  { %1103 = vmatmul.msk.f32.gmra.mxu0 %vm306_vm11, %v329_v50  ;;  %v185_v50 = vld [vmem:[%s1780_s7] sm:$0xff] }
 0x346   :  { %516 = vmatpush.msrb.mxu3 %v185_v50 }
 0x3ba   :  { %v357_v52 = vpop.f32.mrf.mxu0 }
 0x3bb   :  { %1104 = vmatmul.msk.f32.vlgmr.msrb.gmra.mxu1 %vm104_vm1, %v357_v52  ;;  %v445_v52 = vperm.slane %v1555_v51, 1 }
 0x3c2   :  { %v360_v53 = vpop.f32.mrf.mxu0 }
 0x3c3   :  { %1105 = vmatmul.msk.f32.gmra.mxu1 %vm104_vm1, %v360_v53 }
 0x438   :  { %v387_v55 = vpop.f32.mrf.mxu1 }
 0x439   :  { %v388_v56 = vadd.f32 %v387_v55, %v363_v54 }
 0x43b   :  { %v393_v57 = vadd.f32 %v388_v56, %v1451_v5 }
 0x43d   :  { %v395_v58 = vsel %vm104_vm1, %v393_v57, 0.0 }
 0x43e   :  { %396 = vadd.xlane.f32.xlu2 %v395_v58 }
 0x440   :  { %v390_v59 = vpop.f32.mrf.mxu1 }
 0x441   :  { %v391_v60 = vadd.f32 %v390_v59, %v363_v54 }
 0x443   :  { %v394_v61 = vadd.f32 %v391_v60, %v1460_v10  ;;  %v183_v10 = vld [vmem:[%s1779_s6 + $0x10] sm:$0xff] }
 0x444   :  { %465 = vmatpush.msrb.mxu2 %v183_v10 }
 0x445   :  { %v398_v62 = vsel %vm108_vm2, %v394_v61, 0.0 }
 0x446   :  { %399 = vadd.xlane.f32.xlu0 %v398_v62  ;;  %466 = vmatpush.msrb.mxu2 %v182_v11  ;;  %v493_v11 = vperm.slane %v1471_v12, 6 }
 0x448   :  { %467 = vmatpush.msrb.mxu2 %v181_v13 }
 0x4b1   :  { %v397_v63 = vpop.xlane.xlu2 %396 }
 0x4b2   :  { %v401_v0 = vmul.f32 %v397_v63, %v1397_v24 }
 0x4b4   :  { %v403_v1 = vsub.f32 %v393_v57, %v401_v0 }
 0x4b6   :  { %v405_v2 = vmul.f32 %v403_v1, %v403_v1 }
 0x4b8   :  { %v407_v3 = vsel %vm104_vm1, %v405_v2, 0.0 }
 0x4b9   :  { %v400_v4 = vpop.xlane.xlu0 %399  ;;  %408 = vadd.xlane.f32.xlu1 %v407_v3 }
 0x4ba   :  { %v402_v5 = vmul.f32 %v400_v4, %v1397_v24 }
 0x4bc   :  { %v404_v6 = vsub.f32 %v394_v61, %v402_v5 }
 0x4be   :  { %v406_v7 = vmul.f32 %v404_v6, %v404_v6 }
 0x4c0   :  { %v410_v8 = vsel %vm108_vm2, %v406_v7, 0.0 }
 0x4c1   :  { %411 = vadd.xlane.f32.xlu2 %v410_v8 }
 0x52c   :  { %v409_v14 = vpop.xlane.xlu1 %408 }
 0x52d   :  { %v413_v15 = vmul.f32 %v409_v14, %v1397_v24 }
 0x52f   :  { %v415_v16 = vadd.f32 1e-12, %v413_v15 }
 0x531   :  { %1187 = vrsqrt.f32 %v415_v16  ;;  %vm423_vm14 = vweird.f32 %v415_v16 }
 0x534   :  { %v412_v17 = vpop.xlane.xlu2 %411 }
 0x535   :  { %v414_v18 = vmul.f32 %v412_v17, %v1397_v24 }
 0x537   :  { %v1188_v19 = vpop.eup %1187  ;;  %v416_v20 = vadd.f32 1e-12, %v414_v18 }
 0x538   :  { %v418_v21 = vmul.f32 %v1188_v19, %v415_v16  ;;  %vm424_vm13 = vweird.f32 %v1188_v19 }
 0x539   :  { %1189 = vrsqrt.f32 %v416_v20  ;;  %vm425_vm15 = vmor %vm423_vm14, %vm424_vm13  ;;  %vm433_vm3 = vweird.f32 %v416_v20 }
 0x53a   :  { %v419_v22 = vmul.f32 %v1188_v19, %v418_v21 }
 0x53c   :  { %v420_v23 = vmul.f32 0.5, %v419_v22 }
 0x53e   :  { %v421_v25 = vsub.f32 1.5, %v420_v23 }
 0x53f   :  { %v1190_v26 = vpop.eup %1189 }
 0x540   :  { %v422_v27 = vmul.f32 %v1188_v19, %v421_v25  ;;  %v428_v28 = vmul.f32 %v1190_v26, %v416_v20  ;;  %vm434_vm0 = vweird.f32 %v1190_v26 }
 0x541   :  { %vm435_vm4 = vmor %vm433_vm3, %vm434_vm0 }
 0x542   :  { %v426_v30 = vsel %vm425_vm15, %v1188_v19, %v422_v27  ;;  %v429_v31 = vmul.f32 %v1190_v26, %v428_v28 }
 0x543   :  { %v437_v32 = vmul.f32 %v426_v30, %v403_v1 }
 0x544   :  { %v430_v34 = vmul.f32 0.5, %v429_v31 }
 0x545   :  { %v440_v35 = vmul.f32 %v439_v29, %v437_v32  ;;  %v1113_v32 = vld [vmem:[%s1778_s5 + $0x98] sm:$0xff] }
 0x546   :  { %v431_v36 = vsub.f32 1.5, %v430_v34  ;;  %v1121_v34 = vld [vmem:[%s1778_s5 + $0xd8] sm:$0xff]  ;;  %629 = vmatpush.msra.mxu0 %v1113_v32 }
 0x547   :  { %v443_v37 = vadd.f32 %v442_v33, %v440_v35  ;;  %677 = vmatpush.msra.mxu2 %v1121_v34  ;;  %v1112_v35 = vld [vmem:[%s1778_s5 + $0x90] sm:$0xff]  ;;  %v1125_v34 = vld [vmem:[%s1778_s5 + $0xf8] sm:$0xff] }
 0x548   :  { %v432_v38 = vmul.f32 %v1190_v26, %v431_v36  ;;  %v1116_v36 = vld [vmem:[%s1778_s5 + $0xb0] sm:$0xff]  ;;  %630 = vmatpush.msra.mxu0 %v1112_v35 }
 0x549   :  { %1106 = vmatmul.msk.f32.vlgmr.msrb.gmra.mxu2 %vm104_vm1, %v443_v37  ;;  %v1124_v35 = vld [vmem:[%s1778_s5 + $0xf0] sm:$0xff] }
 0x54a   :  { %v436_v39 = vsel %vm435_vm4, %v1190_v26, %v432_v38  ;;  %v1111_v38 = vld [vmem:[%s1778_s5 + $0x88] sm:$0xff] }
 0x54b   :  { %v438_v40 = vmul.f32 %v436_v39, %v404_v6  ;;  %v1115_v39 = vld [vmem:[%s1778_s5 + $0xa8] sm:$0xff]  ;;  %631 = vmatpush.msra.mxu0 %v1111_v38 }
 0x54d   :  { %v441_v41 = vmul.f32 %v439_v29, %v438_v40  ;;  %v1119_v40 = vld [vmem:[%s1778_s5 + $0xc8] sm:$0xff] }
 0x54f   :  { %v444_v42 = vadd.f32 %v442_v33, %v441_v41  ;;  %v1117_v33 = vld [vmem:[%s1778_s5 + $0xb8] sm:$0xff]  ;;  %v1110_v41 = vld [vmem:[%s1778_s5 + $0x80] sm:$0xff] }
 0x550   :  { %653 = vmatpush.msra.mxu1 %v1117_v33  ;;  %632 = vmatpush.msra.mxu0 %v1110_v41 }
 0x551   :  { %1107 = vmatmul.msk.f32.gmra.mxu2 %vm104_vm1, %v444_v42 }
 0x552   :  { %654 = vmatpush.msra.mxu1 %v1116_v36  ;;  %v1123_v36 = vld [vmem:[%s1778_s5 + $0xe8] sm:$0xff] }
 0x554   :  { %655 = vmatpush.msra.mxu1 %v1115_v39 }
 0x5cc   :  { %v469_v53 = vpop.f32.mrf.mxu2 }
 0x5cd   :  { %v470_v54 = vadd.f32 %v469_v53, %v445_v52 }
 0x5cf   :  { %v477_v55 = vmul.f32 0.044715, %v470_v54  ;;  %v475_v4 = vmul.f32 0.5, %v470_v54 }
 0x5d1   :  { %v479_v56 = vmul.f32 %v477_v55, %v470_v54 }
 0x5d3   :  { %v481_v57 = vmul.f32 %v479_v56, %v470_v54 }
 0x5d4   :  { %v472_v58 = vpop.f32.mrf.mxu2 }
 0x5d5   :  { %v473_v59 = vadd.f32 %v472_v58, %v445_v52  ;;  %v483_v60 = vadd.f32 %v481_v57, %v470_v54 }
 0x5d7   :  { %v478_v61 = vmul.f32 0.044715, %v473_v59  ;;  %v485_v62 = vmul.f32 0.7978846, %v483_v60  ;;  %v476_v8 = vmul.f32 0.5, %v473_v59 }
 0x5d9   :  { %1191 = vtanh.f32 %v485_v62  ;;  %v480_v63 = vmul.f32 %v478_v61, %v473_v59  ;;  %v573_v62 = vperm.slane %v1555_v51, 0 }
 0x5db   :  { %v482_v0 = vmul.f32 %v480_v63, %v473_v59 }
 0x5dd   :  { %v484_v1 = vadd.f32 %v482_v0, %v473_v59  ;;  %v570_v59 = vperm.slane %v1471_v12, 7 }
 0x5df   :  { %v1192_v2 = vpop.eup %1191  ;;  %v486_v3 = vmul.f32 0.7978846, %v484_v1 }
 0x5e0   :  { %v489_v5 = vadd.f32 1.0, %v1192_v2 }
 0x5e1   :  { %1193 = vtanh.f32 %v486_v3 }
 0x5e2   :  { %v491_v6 = vmul.f32 %v489_v5, %v475_v4 }
 0x5e4   :  { %1108 = vmatmul.msk.f32.vlgmr.msrb.gmra.mxu3 %vm494_vm5, %v491_v6 }
 0x5e7   :  { %v1194_v7 = vpop.eup %1193 }
 0x5e8   :  { %v490_v9 = vadd.f32 1.0, %v1194_v7 }
 0x5ea   :  { %v492_v10 = vmul.f32 %v490_v9, %v476_v8  ;;  %v1631_v8 = vld [vmem:[%s1781_s8 + $0x10] sm:$0xff] }
 0x5eb   :  { %v640_v9 = vperm.slane %v1631_v8, 1 }
 0x5ec   :  { %1109 = vmatmul.msk.f32.gmra.mxu3 %vm494_vm5, %v492_v10 }
 0x667   :  { %v518_v13 = vpop.f32.mrf.mxu3 }
 0x668   :  { %v519_v14 = vadd.f32 %v518_v13, %v493_v11 }
 0x66a   :  { %v524_v15 = vadd.f32 %v519_v14, %v443_v37  ;;  %v1120_v37 = vld [vmem:[%s1778_s5 + $0xd0] sm:$0xff] }
 0x66b   :  { %678 = vmatpush.msra.mxu2 %v1120_v37 }
 0x66c   :  { %v526_v16 = vsel %vm104_vm1, %v524_v15, 0.0 }
 0x66d   :  { %527 = vadd.xlane.f32.xlu0 %v526_v16  ;;  %679 = vmatpush.msra.mxu2 %v1119_v40  ;;  %v1122_v40 = vld [vmem:[%s1778_s5 + $0xe0] sm:$0xff] }
 0x66f   :  { %v521_v17 = vpop.f32.mrf.mxu3  ;;  %680 = vmatpush.msra.mxu2 %v1118_v43 }
 0x670   :  { %v522_v18 = vadd.f32 %v521_v17, %v493_v11  ;;  %v664_v17 = vperm.slane %v1631_v8, 2 }
 0x672   :  { %v525_v19 = vadd.f32 %v522_v18, %v444_v42  ;;  %v1114_v42 = vld [vmem:[%s1778_s5 + $0xa0] sm:$0xff] }
 0x673   :  { %656 = vmatpush.msra.mxu1 %v1114_v42 }
 0x674   :  { %v529_v20 = vsel %vm108_vm2, %v525_v19, 0.0 }
 0x675   :  { %530 = vadd.xlane.f32.xlu1 %v529_v20  ;;  %796 = vmatpush.msrb.mxu1 %v1125_v34 }
 0x677   :  { %797 = vmatpush.msrb.mxu1 %v1124_v35 }
 0x679   :  { %798 = vmatpush.msrb.mxu1 %v1123_v36 }
 0x67b   :  { %799 = vmatpush.msrb.mxu1 %v1122_v40 }
 0x6e0   :  { %v528_v21 = vpop.xlane.xlu0 %527 }
 0x6e1   :  { %v532_v22 = vmul.f32 %v528_v21, %v1397_v24 }
 0x6e3   :  { %v534_v23 = vsub.f32 %v524_v15, %v532_v22  ;;  %v610_v15 = vperm.slane %v1631_v8, 0 }
 0x6e5   :  { %v536_v25 = vmul.f32 %v534_v23, %v534_v23 }
 0x6e7   :  { %v538_v26 = vsel %vm104_vm1, %v536_v25, 0.0 }
 0x6e8   :  { %539 = vadd.xlane.f32.xlu2 %v538_v26  ;;  %v531_v27 = vpop.xlane.xlu1 %530 }
 0x6e9   :  { %v533_v28 = vmul.f32 %v531_v27, %v1397_v24 }
 0x6eb   :  { %v1566_v29 = vsub.f32 %v525_v19, %v533_v28 }
 0x6ed   :  { %v537_v30 = vmul.f32 %v1566_v29, %v1566_v29 }
 0x6ef   :  { %v541_v31 = vsel %vm108_vm2, %v537_v30, 0.0 }
 0x6f0   :  { %542 = vadd.xlane.f32.xlu0 %v541_v31 }
 0x75b   :  { %v540_v44 = vpop.xlane.xlu2 %539 }
 0x75c   :  { %v544_v45 = vmul.f32 %v540_v44, %v1397_v24  ;;  %v777_v44 = vperm.slane %v1631_v8, 3 }
 0x75e   :  { %v546_v46 = vadd.f32 1e-12, %v544_v45 }
 0x760   :  { %1195 = vrsqrt.f32 %v546_v46  ;;  %vm554_vm7 = vweird.f32 %v546_v46 }
 0x763   :  { %v543_v47 = vpop.xlane.xlu0 %542 }
 0x764   :  { %v545_v48 = vmul.f32 %v543_v47, %v1397_v24 }
 0x766   :  { %v1196_v49 = vpop.eup %1195  ;;  %v547_v50 = vadd.f32 1e-12, %v545_v48 }
 0x767   :  { %v549_v52 = vmul.f32 %v1196_v49, %v546_v46  ;;  %vm555_vm6 = vweird.f32 %v1196_v49 }
 0x768   :  { %1197 = vrsqrt.f32 %v547_v50  ;;  %vm556_vm8 = vmor %vm554_vm7, %vm555_vm6  ;;  %vm564_vm13 = vweird.f32 %v547_v50  ;;  %vm1000_vm7 = vcmask 1046528  }
 0x769   :  { %v550_v53 = vmul.f32 %v1196_v49, %v549_v52 }
 0x76b   :  { %v551_v54 = vmul.f32 0.5, %v550_v53 }
 0x76d   :  { %v552_v55 = vsub.f32 1.5, %v551_v54 }
 0x76e   :  { %v1198_v56 = vpop.eup %1197 }
 0x76f   :  { %v553_v57 = vmul.f32 %v1196_v49, %v552_v55  ;;  %v559_v58 = vmul.f32 %v1198_v56, %v547_v50  ;;  %vm565_vm9 = vweird.f32 %v1198_v56 }
 0x770   :  { %vm566_vm14 = vmor %vm564_vm13, %vm565_vm9 }
 0x771   :  { %v557_v60 = vsel %vm556_vm8, %v1196_v49, %v553_v57  ;;  %v560_v61 = vmul.f32 %v1198_v56, %v559_v58 }
 0x772   :  { %v568_v63 = vmul.f32 %v557_v60, %v534_v23 }
 0x773   :  { %v561_v0 = vmul.f32 0.5, %v560_v61  ;;  %v1131_v61 = vld [vmem:[%s1779_s6 + $0x38] sm:$0xff] }
 0x774   :  { %v571_v1 = vmul.f32 %v570_v59, %v568_v63  ;;  %878 = vmatpush.msrb.mxu2 %v1131_v61  ;;  %v1129_v63 = vld [vmem:[%s1779_s6 + $0x28] sm:$0xff] }
 0x775   :  { %v562_v2 = vsub.f32 1.5, %v561_v0  ;;  %v1128_v0 = vld [vmem:[%s1779_s6 + $0x20] sm:$0xff] }
 0x776   :  { %v1611_v3 = vadd.f32 %v573_v62, %v571_v1 }
 0x777   :  { %v563_v4 = vmul.f32 %v1198_v56, %v562_v2 }
 0x778   :  { %1140 = vmatmul.msk.f32.vlgmr.msra.gmra.mxu0 %vm104_vm1, %v1611_v3  ;;  %1142 = vmatmul.msk.f32.vlgmr.msra.gmra.mxu1 %vm104_vm1, %v1611_v3 }
 0x779   :  { %v567_v12 = vsel %vm566_vm14, %v1198_v56, %v563_v4  ;;  %1144 = vmatmul.msk.f32.vlgmr.msra.gmra.mxu2 %vm104_vm1, %v1611_v3 }
 0x77a   :  { %v569_v51 = vmul.f32 %v567_v12, %v1566_v29 }
 0x77c   :  { %v572_v5 = vmul.f32 %v570_v59, %v569_v51 }
 0x77e   :  { %v1620_v6 = vadd.f32 %v573_v62, %v572_v5  ;;  %v1130_v62 = vld [vmem:[%s1779_s6 + $0x30] sm:$0xff] }
 0x77f   :  { %879 = vmatpush.msrb.mxu2 %v1130_v62 }
 0x780   :  { %1141 = vmatmul.msk.f32.gmra.mxu0 %vm104_vm1, %v1620_v6  ;;  %1143 = vmatmul.msk.f32.gmra.mxu1 %vm104_vm1, %v1620_v6 }
 0x781   :  { %1145 = vmatmul.msk.f32.gmra.mxu2 %vm104_vm1, %v1620_v6 }
 0x782   :  { %880 = vmatpush.msrb.mxu2 %v1129_v63 }
 0x784   :  { %881 = vmatpush.msrb.mxu2 %v1128_v0 }
 0x7f5   :  { %v658_v7 = vpop.f32.mrf.mxu1  ;;  %v634_v14 = vpop.f32.mrf.mxu0 }
 0x7f6   :  { %v659_v16 = vadd.f32 %v658_v7, %v640_v9  ;;  %v635_v19 = vadd.f32 %v634_v14, %v610_v15 }
 0x7fc   :  { %v682_v10 = vpop.f32.mrf.mxu2 }
 0x7fd   :  { %v661_v11 = vpop.f32.mrf.mxu1  ;;  %v683_v21 = vadd.f32 %v682_v10, %v664_v17  ;;  %v637_v22 = vpop.f32.mrf.mxu0 }
 0x7fe   :  { %v662_v13 = vadd.f32 %v661_v11, %v640_v9  ;;  %v638_v23 = vadd.f32 %v637_v22, %v610_v15  ;;  %v853_v11 = vperm.slane %v1631_v8, 4  ;;  %v856_v15 = vperm.slane %v1631_v8, 5  ;;  %v1135_v22 = vld [vmem:[%s1780_s7 + $0x58] sm:$0xff] }
 0x800   :  { %1146 = vmatpush.xpose.msk.msra.mxu3 %vm104_vm1, %v662_v13 }
 0x804   :  { %v685_v18 = vpop.f32.mrf.mxu2  ;;  %1147 = vmatpush.xpose.msk.msra.mxu3 %vm104_vm1, %v659_v16 }
 0x805   :  { %v686_v20 = vadd.f32 %v685_v18, %v664_v17  ;;  %v1139_v18 = vld [vmem:[%s1780_s7 + $0x78] sm:$0xff] }
 0x807   :  { %1150 = vmatpush.msk.msrb.mxu0 %vm336_vm10, %v686_v20  ;;  %1148 = vmatmul.msk.f32.vlgmr.msra.gmra.mxu3 %vm104_vm1, %v635_v19  ;;  %v1138_v19 = vld [vmem:[%s1780_s7 + $0x70] sm:$0xff]  ;;  %v1137_v20 = vld [vmem:[%s1780_s7 + $0x68] sm:$0xff] }
 0x808   :  { %922 = vmatpush.msrb.mxu3 %v1139_v18 }
 0x809   :  { %769 = vmatpush.msrb.mxu0 %v683_v21  ;;  %v1136_v21 = vld [vmem:[%s1780_s7 + $0x60] sm:$0xff] }
 0x80a   :  { %923 = vmatpush.msrb.mxu3 %v1138_v19 }
 0x80c   :  { %924 = vmatpush.msrb.mxu3 %v1137_v20 }
 0x80e   :  { %925 = vmatpush.msrb.mxu3 %v1136_v21 }
 0x80f   :  { %1149 = vmatmul.msk.f32.gmra.mxu3 %vm104_vm1, %v638_v23  ;;  %v1134_v23 = vld [vmem:[%s1780_s7 + $0x50] sm:$0xff] }
 0x810   :  { %926 = vmatpush.msrb.mxu3 %v1135_v22 }
 0x812   :  { %927 = vmatpush.msrb.mxu3 %v1134_v23 }
 0x88a   :  { %v717_v25 = vpop.f32.mrf.mxu3 }
 0x88b   :  { %v723_v26 = vsel %vm306_vm11, %v717_v25, -inf }
 0x88c   :  { %724 = vmax.xlane.f32.xlu1 %v723_v26 }
 0x892   :  { %v720_v32 = vpop.f32.mrf.mxu3 }
 0x893   :  { %v726_v33 = vsel %vm310_vm12, %v720_v32, -inf }
 0x8ff   :  { %v725_v27 = vpop.xlane.xlu1 %724 }
 0x900   :  { %v729_v28 = vsub.f32 %v717_v25, %v725_v27  ;;  %v1133_v27 = vld [vmem:[%s1780_s7 + $0x48] sm:$0xff] }
 0x901   :  { %928 = vmatpush.msrb.mxu3 %v1133_v27 }
 0x902   :  { %v731_v29 = vmul.f32 1.442695, %v729_v28 }
 0x904   :  { %1199 = vpow2.f32 %v731_v29  ;;  %v1132_v29 = vld [vmem:[%s1780_s7 + $0x40] sm:$0xff] }
 0x905   :  { %929 = vmatpush.msrb.mxu3 %v1132_v29 }
 0x90a   :  { %v1200_v30 = vpop.eup %1199 }
 0x90b   :  { %v735_v31 = vsel %vm306_vm11, %v1200_v30, 0.0 }
 0x90c   :  { %736 = vadd.xlane.f32.xlu2 %v735_v31  ;;  %v1719_v31 = vld [vmem:[%s1781_s8 + $0x18] sm:$0x3] }
 0x90d   :  { %v961_v27 = vperm.slane %v1719_v31, 0 }
 0x914   :  { %727 = vmax.xlane.f32.xlu2 %v726_v33 }
 0x97f   :  { %v737_v37 = vpop.xlane.xlu2 %736 }
 0x980   :  { %1201 = vrcp.f32 %v737_v37 }
 0x986   :  { %v1202_v38 = vpop.eup %1201 }
 0x987   :  { %v743_v39 = vmul.f32 %v1202_v38, %v1200_v30  ;;  %v728_v42 = vpop.xlane.xlu2 %727 }
 0x988   :  { %v730_v43 = vsub.f32 %v720_v32, %v728_v42  ;;  %v859_v32 = vperm.slane %v1719_v31, 1 }
 0x989   :  { %1151 = vmatmul.msk.f32.vlgmr.msrb.gmra.mxu0 %vm306_vm11, %v743_v39 }
 0x98a   :  { %v733_v45 = vmul.f32 1.442695, %v730_v43  ;;  %v907_v43 = vperm.slane %v1631_v8, 6 }
 0x98c   :  { %1203 = vpow2.f32 %v733_v45 }
 0x992   :  { %v1204_v50 = vpop.eup %1203 }
 0x993   :  { %v738_v52 = vsel %vm310_vm12, %v1204_v50, 0.0 }
 0xa06   :  { %v771_v41 = vpop.f32.mrf.mxu0 }
 0xa07   :  { %1153 = vmatmul.msk.f32.vlgmr.msrb.gmra.mxu1 %vm104_vm1, %v771_v41 }
 0xa84   :  { %v801_v46 = vpop.f32.mrf.mxu1 }
 0xa85   :  { %v802_v47 = vadd.f32 %v801_v46, %v777_v44 }
 0xa87   :  { %v807_v48 = vadd.f32 %v802_v47, %v1611_v3 }
 0xa89   :  { %v809_v49 = vsel %vm104_vm1, %v807_v48, 0.0 }
 0xa8a   :  { %810 = vadd.xlane.f32.xlu0 %v809_v49 }
 0xa92   :  { %739 = vadd.xlane.f32.xlu0 %v738_v52 }
 0xafd   :  { %v811_v53 = vpop.xlane.xlu0 %810 }
 0xafe   :  { %v815_v54 = vmul.f32 %v811_v53, %v1397_v24 }
 0xb00   :  { %v817_v55 = vsub.f32 %v807_v48, %v815_v54 }
 0xb02   :  { %v819_v56 = vmul.f32 %v817_v55, %v817_v55 }
 0xb04   :  { %v821_v57 = vsel %vm104_vm1, %v819_v56, 0.0 }
 0xb05   :  { %822 = vadd.xlane.f32.xlu1 %v821_v57  ;;  %v740_v58 = vpop.xlane.xlu0 %739 }
 0xb06   :  { %1205 = vrcp.f32 %v740_v58 }
 0xb0c   :  { %v1206_v59 = vpop.eup %1205 }
 0xb0d   :  { %v744_v60 = vmul.f32 %v1206_v59, %v1204_v50 }
 0xb0f   :  { %1152 = vmatmul.msk.f32.gmra.mxu0 %vm306_vm11, %v744_v60 }
 0xb78   :  { %v823_v1 = vpop.xlane.xlu1 %822 }
 0xb79   :  { %v827_v2 = vmul.f32 %v823_v1, %v1397_v24 }
 0xb7b   :  { %v829_v3 = vadd.f32 1e-12, %v827_v2 }
 0xb7d   :  { %1207 = vrsqrt.f32 %v829_v3  ;;  %vm837_vm11 = vweird.f32 %v829_v3 }
 0xb83   :  { %v1208_v4 = vpop.eup %1207 }
 0xb84   :  { %v832_v12 = vmul.f32 %v1208_v4, %v829_v3  ;;  %vm838_vm10 = vweird.f32 %v1208_v4 }
 0xb85   :  { %vm839_vm12 = vmor %vm837_vm11, %vm838_vm10 }
 0xb86   :  { %v833_v51 = vmul.f32 %v1208_v4, %v832_v12 }
 0xb88   :  { %v834_v5 = vmul.f32 0.5, %v833_v51 }
 0xb8a   :  { %v835_v7 = vsub.f32 1.5, %v834_v5 }
 0xb8c   :  { %v836_v9 = vmul.f32 %v1208_v4, %v835_v7  ;;  %v774_v10 = vpop.f32.mrf.mxu0  ;;  %v966_v7 = vld [vmem:[%s1782_s9 + $0x18] sm:$0xff] }
 0xb8d   :  { %1154 = vmatmul.msk.f32.gmra.mxu1 %vm104_vm1, %v774_v10  ;;  %987 = vmatpush.msra.mxu0 %v966_v7  ;;  %v964_v10 = vld [vmem:[%s1782_s9 + $0x8] sm:$0xff] }
 0xb8e   :  { %v840_v13 = vsel %vm839_vm12, %v1208_v4, %v836_v9  ;;  %v965_v9 = vld [vmem:[%s1782_s9 + $0x10] sm:$0xff] }
 0xb8f   :  { %v851_v14 = vmul.f32 %v840_v13, %v817_v55  ;;  %988 = vmatpush.msra.mxu0 %v965_v9  ;;  %v1014_v13 = vld [vmem:[%s1774_s1] sm:$0x7f] }
 0xb91   :  { %v854_v16 = vmul.f32 %v853_v11, %v851_v14  ;;  %989 = vmatpush.msra.mxu0 %v964_v10 }
 0xb93   :  { %v857_v17 = vadd.f32 %v856_v15, %v854_v16 }
 0xb95   :  { %1155 = vmatmul.msk.f32.vlgmr.msrb.gmra.mxu2 %vm104_vm1, %v857_v17 }
 0xc0a   :  { %v804_v25 = vpop.f32.mrf.mxu1 }
 0xc0b   :  { %v805_v26 = vadd.f32 %v804_v25, %v777_v44  ;;  %v959_v25 = vperm.slane %v1631_v8, 7 }
 0xc0d   :  { %v808_v28 = vadd.f32 %v805_v26, %v1620_v6 }
 0xc0f   :  { %v812_v30 = vsel %vm108_vm2, %v808_v28, 0.0 }
 0xc10   :  { %813 = vadd.xlane.f32.xlu0 %v812_v30 }
 0xc18   :  { %v883_v33 = vpop.f32.mrf.mxu2 }
 0xc19   :  { %v884_v6 = vadd.f32 %v883_v33, %v859_v32 }
 0xc1b   :  { %v891_v34 = vmul.f32 0.044715, %v884_v6  ;;  %v889_v40 = vmul.f32 0.5, %v884_v6 }
 0xc1d   :  { %v893_v35 = vmul.f32 %v891_v34, %v884_v6 }
 0xc1f   :  { %v895_v36 = vmul.f32 %v893_v35, %v884_v6 }
 0xc21   :  { %v897_v37 = vadd.f32 %v895_v36, %v884_v6 }
 0xc23   :  { %v899_v38 = vmul.f32 0.7978846, %v897_v37 }
 0xc25   :  { %1209 = vtanh.f32 %v899_v38 }
 0xc2b   :  { %v1210_v39 = vpop.eup %1209 }
 0xc2c   :  { %v903_v41 = vadd.f32 1.0, %v1210_v39 }
 0xc2e   :  { %v905_v42 = vmul.f32 %v903_v41, %v889_v40 }
 0xc30   :  { %1157 = vmatmul.msk.f32.vlgmr.msrb.gmra.mxu3 %vm494_vm5, %v905_v42  ;;  %v996_v42 = vlaneseq }
 0xc83   :  { %v814_v44 = vpop.xlane.xlu0 %813 }
 0xc84   :  { %v816_v46 = vmul.f32 %v814_v44, %v1397_v24  ;;  %v1172_v44 = vld [vmem:[%s1783_s10] ss:$0 sm:$0xff]  ;;  %s1279_s10 = smov [#allocation7]  }
 0xc85   :  { %s1045_s0 = sshll.u32 %s1279_s10, 4  ;;  %s1046_s0 = int_to_ptr.vmem [resolvable:$true] %s1045_s0 }
 0xc86   :  { %v818_v49 = vsub.f32 %v808_v28, %v816_v46 }
 0xc88   :  { %v820_v52 = vmul.f32 %v818_v49, %v818_v49 }
 0xc8a   :  { %v824_v53 = vsel %vm108_vm2, %v820_v52, 0.0 }
 0xcb3   :  { %v931_v45 = vpop.f32.mrf.mxu3 }
 0xcb4   :  { %v932_v47 = vadd.f32 %v931_v45, %v907_v43  ;;  %v997_v43 = vand.u32 127, %v996_v42 }
 0xcb6   :  { %v936_v48 = vadd.f32 %v932_v47, %v857_v17 }
 0xcb8   :  { %v937_v50 = vsel %vm104_vm1, %v936_v48, 0.0 }
 0xcb9   :  { %938 = vadd.xlane.f32.xlu1 %v937_v50 }
 0xcc1   :  { %825 = vadd.xlane.f32.xlu1 %v824_v53 }
 0xd2c   :  { %v939_v54 = vpop.xlane.xlu1 %938 }
 0xd2d   :  { %v940_v55 = vmul.f32 %v939_v54, %v1397_v24 }
 0xd2f   :  { %v941_v56 = vsub.f32 %v936_v48, %v940_v55  ;;  %v1278_v48 = vmov 0.0  }
 0xd31   :  { %v942_v57 = vmul.f32 %v941_v56, %v941_v56 }
 0xd33   :  { %v943_v58 = vsel %vm104_vm1, %v942_v57, 0.0 }
 0xd34   :  { %944 = vadd.xlane.f32.xlu2 %v943_v58  ;;  %v826_v59 = vpop.xlane.xlu1 %825 }
 0xd35   :  { %v828_v60 = vmul.f32 %v826_v59, %v1397_v24 }
 0xd37   :  { %v830_v61 = vadd.f32 1e-12, %v828_v60 }
 0xd39   :  { %1211 = vrsqrt.f32 %v830_v61  ;;  %vm847_vm15 = vweird.f32 %v830_v61 }
 0xd3f   :  { %v1212_v62 = vpop.eup %1211 }
 0xd40   :  { %v842_v63 = vmul.f32 %v1212_v62, %v830_v61  ;;  %vm848_vm2 = vweird.f32 %v1212_v62 }
 0xd41   :  { %vm849_vm0 = vmor %vm847_vm15, %vm848_vm2 }
 0xd42   :  { %v843_v0 = vmul.f32 %v1212_v62, %v842_v63 }
 0xd44   :  { %v844_v1 = vmul.f32 0.5, %v843_v0 }
 0xd46   :  { %v845_v2 = vsub.f32 1.5, %v844_v1 }
 0xd48   :  { %v846_v3 = vmul.f32 %v1212_v62, %v845_v2 }
 0xd4a   :  { %v850_v4 = vsel %vm849_vm0, %v1212_v62, %v846_v3 }
 0xd4b   :  { %v852_v12 = vmul.f32 %v850_v4, %v818_v49 }
 0xd4d   :  { %v855_v51 = vmul.f32 %v853_v11, %v852_v12  ;;  %v963_v11 = vld [vmem:[%s1782_s9] sm:$0xff] }
 0xd4e   :  { %990 = vmatpush.msra.mxu0 %v963_v11 }
 0xd4f   :  { %v858_v5 = vadd.f32 %v856_v15, %v855_v51  ;;  %v1277_v15 = vmov 0  }
 0xd50   :  { %1169 = vset.pattern.permute.xlu0 %v1277_v15 }
 0xd51   :  { %1156 = vmatmul.msk.f32.gmra.mxu2 %vm104_vm1, %v858_v5  ;;  %1016 = vperm.xlu0 %1169, %v1014_v13  }
 0xda7   :  { %v945_v14 = vpop.xlane.xlu2 %944 }
 0xda8   :  { %v946_v16 = vmul.f32 %v945_v14, %v1397_v24 }
 0xdaa   :  { %v947_v17 = vadd.f32 1e-12, %v946_v16 }
 0xdac   :  { %1213 = vrsqrt.f32 %v947_v17  ;;  %vm954_vm4 = vweird.f32 %v947_v17 }
 0xdb2   :  { %v1214_v18 = vpop.eup %1213 }
 0xdb3   :  { %v949_v19 = vmul.f32 %v1214_v18, %v947_v17  ;;  %vm955_vm3 = vweird.f32 %v1214_v18 }
 0xdb4   :  { %vm956_vm6 = vmor %vm954_vm4, %vm955_vm3 }
 0xdb5   :  { %v950_v20 = vmul.f32 %v1214_v18, %v949_v19 }
 0xdb7   :  { %v951_v21 = vmul.f32 0.5, %v950_v20 }
 0xdb9   :  { %v952_v22 = vsub.f32 1.5, %v951_v21 }
 0xdbb   :  { %v953_v23 = vmul.f32 %v1214_v18, %v952_v22 }
 0xdbd   :  { %v957_v26 = vsel %vm956_vm6, %v1214_v18, %v953_v23 }
 0xdbe   :  { %v958_v28 = vmul.f32 %v957_v26, %v941_v56 }
 0xdc0   :  { %v960_v29 = vmul.f32 %v959_v25, %v958_v28 }
 0xdc2   :  { %v962_v24 = vadd.f32 %v961_v27, %v960_v29 }
 0xdc3   :  { %v1017_v31 = vpop.permute.xlu0 %1016 }
 0xdc4   :  { %v972_v30 = vrot.slane %v962_v24, 1  ;;  %vm1018_vm8 = vcmp.eq.s32.totalorder %v997_v43, %v1017_v31 }
 0xdc5   :  { %v1160_v49 = vsel %vm1018_vm8, 1.0, %v1278_v48 }
 0xdc6   :  { %1159 = vmatmul.msk.f32.vlgmr.msra.gmra.mxu0 %vm104_vm1, %v972_v30  ;;  %vm998_vm1 = vcmp.lt.s32.totalorder %v997_v43, 2 }
 0xdd4   :  { %v886_v33 = vpop.f32.mrf.mxu2 }
 0xdd5   :  { %v887_v6 = vadd.f32 %v886_v33, %v859_v32 }
 0xdd7   :  { %v892_v34 = vmul.f32 0.044715, %v887_v6  ;;  %v890_v39 = vmul.f32 0.5, %v887_v6 }
 0xdd9   :  { %v894_v35 = vmul.f32 %v892_v34, %v887_v6 }
 0xddb   :  { %v896_v36 = vmul.f32 %v894_v35, %v887_v6 }
 0xddd   :  { %v898_v37 = vadd.f32 %v896_v36, %v887_v6 }
 0xddf   :  { %v900_v38 = vmul.f32 0.7978846, %v898_v37 }
 0xde1   :  { %1215 = vtanh.f32 %v900_v38 }
 0xde7   :  { %v1216_v8 = vpop.eup %1215 }
 0xde8   :  { %v904_v40 = vadd.f32 1.0, %v1216_v8 }
 0xdea   :  { %v906_v41 = vmul.f32 %v904_v40, %v890_v39 }
 0xdec   :  { %1158 = vmatmul.msk.f32.gmra.mxu3 %vm494_vm5, %v906_v41  ;;  %vm1026_vm5 = vcmask 6144  }
 0xe43   :  { %v992_v32 = vpop.f32.mrf.mxu0 }
 0xe44   :  { %v993_v45 = vadd.f32 %v1172_v44, %v992_v32 }
 0xe46   :  { %995 = vst [vmem:[#allocation7] sm:$0x7f] %v993_v45  ;;  %v999_v46 = vsel %vm998_vm1, %v993_v45, -1e+30  ;;  %v1021_v50 = vmul.f32 %v1160_v49, %v993_v45 }
 0xe47   :  { %v1001_v47 = vsel %vm1000_vm7, %v999_v46, -inf  ;;  %1050 = dma.vmem_to_hbm [thread:$0]  %s1046_s0, 128, %s1048_s2, [#allocation4]  }
 0xe48   :  { %1002 = vmax.xlane.f32.xlu2 %v1001_v47  ;;  %v1022_v52 = vsel %vm1000_vm7, %v1021_v50, 0.0 }
 0xe50   :  { %1023 = vadd.xlane.f32.xlu2 %v1022_v52 }
 0xe6f   :  { %v934_v53 = vpop.f32.mrf.mxu3 }
 0xebb   :  { %v1003_v54 = vpop.xlane.xlu2 %1002 }
 0xebc   :  { %v1004_v55 = vsub.f32 %v999_v46, %v1003_v54 }
 0xebe   :  { %v1005_v56 = vmul.f32 1.442695, %v1004_v55 }
 0xec0   :  { %1217 = vpow2.f32 %v1005_v56 }
 0xec3   :  { %v1024_v0 = vpop.xlane.xlu2 %1023 }
 0xec6   :  { %v1218_v57 = vpop.eup %1217 }
 0xec7   :  { %v1007_v58 = vsel %vm998_vm1, %v1218_v57, 0.0 }
 0xec8   :  { %v1008_v59 = vsel %vm1000_vm7, %v1007_v58, 0.0 }
 0xec9   :  { %1009 = vadd.xlane.f32.xlu1 %v1008_v59 }
 0xf3c   :  { %v1010_v60 = vpop.xlane.xlu1 %1009 }
 0xf3d   :  { %1219 = vlog2.f32 %v1010_v60 }
 0xf43   :  { %v1220_v61 = vpop.eup %1219 }
 0xf44   :  { %v1012_v62 = vmul.f32 0.6931472, %v1220_v61 }
 0xf46   :  { %v1013_v63 = vadd.f32 %v1012_v62, %v1003_v54 }
 0xf48   :  { %v1025_v1 = vsub.f32 %v1013_v63, %v1024_v0 }
 0xf4a   :  { %v1027_v2 = vsel %vm1026_vm5, %v1025_v1, 0.0 }
 0xf4b   :  { %1028 = vadd.xlane.f32.xlu1 %v1027_v2 }
 0xfbe   :  { %v1029_v3 = vpop.xlane.xlu1 %1028 }
 0xfbf   :  { %v1030_v4 = vrot.slane %v1029_v3, 4 }
 0xfc1   :  { %v1031_v12 = vadd.f32 %v1030_v4, %v1029_v3 }
 0xfc3   :  { %v1032_v51 = vrot.slane %v1031_v12, 2 }
 0xfc5   :  { %v1033_v5 = vadd.f32 %v1032_v51, %v1031_v12 }
 0xfc7   :  { %v1034_v7 = vrot.slane %v1033_v5, 1 }
 0xfc9   :  { %v1035_v9 = vadd.f32 %v1034_v7, %v1033_v5 }
 0xfcb   :  { %1161 = vpush %v1035_v9 }
 0xffc   :  { %s1162_s18 = spop %1161 }
 0xffd   :  { %s1037_s20 = smul.f32 0.14285715, %s1162_s18 }
 0xfff   :  { %1039 = sst [smem:[#allocation8]] %s1037_s20 }
0x1000   :  { %1059 = dma.smem_to_hbm %s1280_s11, 16, %s1057_s17, [#allocation5]  }
0x1001   :  { %1271 = dma.done.wait [#allocation4], 128  }
0x1002   :  { %1272 = vsyncadd [#allocation4], 4294967168 }
0x1003   :  { %1273 = dma.done.wait [#allocation5], 16  }
0x1004   :  { %1274 = vsyncadd [#allocation5], 4294967280 }
0x1005   :  { %1068 = sfence }
0x1006   :  { %1069 = vsyncpa [#allocation4], 1 }
0x1007   :  { %1070 = vsyncpa [#allocation5], 1 }
0x1008   :  { %1071 = vsyncpa [#allocation6], 1 }

</bundles_post_ra>
